<compile_context>
chip_gen: v7x
topology: tpu7x:2x2x1
jax: 0.10.0
libtpu: 0.0.40
codegen_flags: <defaults>
</compile_context>

<pallas_src>
import functools
import math

import jax
import jax.numpy as jnp
from jax.experimental import pallas as pl
from jax.experimental.pallas import tpu as pltpu


def _cond_encoder_kernel(
    x_ref, cond_ref, mask_ref, posq_ref, posk_ref,
    gpre_ref, bpre_ref, gpost_ref, bpost_ref,
    wqkv_ref, bqkv_ref, wo_ref, bo_ref, wc_ref, bc_ref,
    ls_ref, w1_ref, b1_ref, w2_ref, b2_ref,
    out_ref, attn_ref, o_scratch,
    *, TB, L, D, H, mm_dtype,
):
    DH = D // H
    N = TB * L

    x = x_ref[...].reshape(N, D)                        # (TB*L, D) f32
    g_pre, b_pre = gpre_ref[...], bpre_ref[...]         # (1, D)
    g_post, b_post = gpost_ref[...], bpost_ref[...]     # (1, D)
    ls_gamma = ls_ref[...]                              # (1, D)

    def layernorm(v, g, b):
        mu = jnp.mean(v, axis=-1, keepdims=True)
        var = jnp.mean(jnp.square(v - mu), axis=-1, keepdims=True)
        return (v - mu) * jax.lax.rsqrt(var + 1e-5) * g + b

    # ---- pre_norm[0] --------------------------------------------------------
    v_norm = layernorm(x, g_pre, b_pre)                 # (N, D) f32

    # ---- fused QKV projection (single (N,D)x(D,3D) matmul) -------------------
    # (v_norm + pos) @ Wq == v_norm @ Wq + pos @ Wq; the pos terms are
    # batch-independent and arrive precomputed as posq_ref / posk_ref.
    proj = (jnp.dot(v_norm.astype(mm_dtype), wqkv_ref[...],
                    preferred_element_type=jnp.float32)
            + bqkv_ref[...])                            # (N, 3D) f32
    proj = proj.reshape(TB, L, 3 * D)

    # condition projection, added to the keys (CondAttention approximation)
    cond_p = (jnp.dot(cond_ref[...].reshape(TB, D).astype(mm_dtype), wc_ref[...],
                      preferred_element_type=jnp.float32)
              + bc_ref[...])                            # (TB, D)

    scale = 1.0 / math.sqrt(DH)
    q = (proj[:, :, :D] + posq_ref[...][None]) * scale          # scale hoisted
    k = proj[:, :, D:2 * D] + posk_ref[...][None] + cond_p[:, None, :]
    v = proj[:, :, 2 * D:]

    q = q.astype(mm_dtype)
    k = k.astype(mm_dtype)
    v = v.astype(mm_dtype)

    # additive key-padding bias, hoisted out of the head loop
    mask = mask_ref[...].reshape(TB, 1, L)              # 1.0 == invalid key
    bias = jnp.where(mask > 0.5, jnp.float32(-1e30), jnp.float32(0.0))

    # ---- multi-head attention ------------------------------------------------
    attn_ref[...] = jnp.zeros_like(attn_ref)            # VMEM-resident accum
    for h in range(H):                                  # H is small and static
        sl = slice(h * DH, (h + 1) * DH)
        s = jnp.einsum('bqd,bkd->bqk', q[:, :, sl], k[:, :, sl],
                       preferred_element_type=jnp.float32)      # (TB, L, L)
        s = s + bias
        s = s - jnp.max(s, axis=-1, keepdims=True)
        e = jnp.exp(s)
        p = e * pl.reciprocal(jnp.sum(e, axis=-1, keepdims=True), approx=True)
        attn_ref[...] += p
        # head output goes straight into the VMEM scratch (no concatenate)
        o_scratch[:, :, sl] = jnp.einsum('bqk,bkd->bqd', p.astype(mm_dtype),
                                         v[:, :, sl],
                                         preferred_element_type=jnp.float32)
    attn_ref[...] *= jnp.float32(1.0 / H)               # head-averaged weights

    # ---- output projection ---------------------------------------------------
    attn_out = o_scratch[...].reshape(N, D).astype(mm_dtype)
    new_inputs = (jnp.dot(attn_out, wo_ref[...],
                          preferred_element_type=jnp.float32) + bo_ref[...])

    # ---- layer_scale_block[0](inputs, post_norm[0](new_inputs)) --------------
    x1 = x + ls_gamma * layernorm(new_inputs, g_post, b_post)

    # ---- feed_forward(pre_norm[1](x1)) ---------------------------------------
    # TODO(synk): for very large FF, tile the FFN weights over an extra
    # ("arbitrary") grid axis instead of loading them as full VMEM blocks.
    h1 = layernorm(x1, g_pre, b_pre).astype(mm_dtype)
    f = (jnp.dot(h1, w1_ref[...], preferred_element_type=jnp.float32)
         + b1_ref[...])
    f = jnp.maximum(f, 0.0).astype(mm_dtype)            # relu (dropout = id)
    f = (jnp.dot(f, w2_ref[...], preferred_element_type=jnp.float32)
         + b2_ref[...])

    # ---- layer_scale_block[1](x1, post_norm[1](ffn)) --------------------------
    out_ref[...] = (x1 + ls_gamma * layernorm(f, g_post, b_post)).reshape(TB, L, D)


def _choose_tb(B, L, target_rows=256):
    """Largest batch block TB (divisor of B) with TB*L <= target_rows,
    preferring >= 2 grid steps so megacore (v7x) has work on both cores."""
    divs = [d for d in range(1, B + 1) if B % d == 0]
    fit = [d for d in divs if d * L <= target_rows] or [1]
    multi = [d for d in fit if B // d >= 2]
    return max(multi) if multi else max(fit)


def condition_encoder_layer(inputs, condition, padding_mask, params, *,
                            head_num, batch_block=None,
                            mm_dtype=jnp.bfloat16, vmem_limit_bytes=None):
    """inputs (B,L,D) f32, condition (B,D) f32, padding_mask (B,L) f32 (1=pad)."""
    B, L, D = inputs.shape
    FF = params["w1"].shape[1]
    assert D % head_num == 0 and D % 2 == 0

    TB = batch_block if batch_block is not None else _choose_tb(B, L)
    assert B % TB == 0, "batch block must divide batch size"

    # ---- plain-JAX glue: sinusoidal PositionEncoder(L, D) --------------------
    position = jnp.arange(L, dtype=jnp.float32)[:, None]
    div = jnp.exp(jnp.arange(0, D, 2, dtype=jnp.float32) * (-math.log(10000.0) / D))
    pos = jnp.zeros((L, D), jnp.float32)
    pos = pos.at[:, 0::2].set(jnp.sin(position * div))
    pos = pos.at[:, 1::2].set(jnp.cos(position * div))

    # batch-independent positional contributions to q / k (f32, once per call)
    pos_q = pos @ params["wq"]                          # (L, D)
    pos_k = pos @ params["wk"]                          # (L, D)

    # fused QKV weight / bias
    wqkv = jnp.concatenate([params["wq"], params["wk"], params["wv"]], axis=1)
    bqkv = jnp.concatenate([params["bq"], params["bk"], params["bv"]])

    to_mm = lambda w: w.astype(mm_dtype)                # weights: half HBM/VMEM
    row = lambda a: a.reshape(1, -1).astype(jnp.float32)

    cond3 = condition.reshape(B, 1, D).astype(jnp.float32)
    mask3 = padding_mask.reshape(B, 1, L).astype(jnp.float32)

    kernel = functools.partial(_cond_encoder_kernel,
                               TB=TB, L=L, D=D, H=head_num, mm_dtype=mm_dtype)

    full = lambda shape: pl.BlockSpec(shape, lambda b: (0, 0))
    bat3 = lambda shape: pl.BlockSpec(shape, lambda b: (b, 0, 0))

    in_specs = [
        bat3((TB, L, D)),                   # inputs
        bat3((TB, 1, D)),                   # condition
        bat3((TB, 1, L)),                   # key padding mask
        full((L, D)), full((L, D)),         # pos @ Wq, pos @ Wk
        full((1, D)), full((1, D)),         # pre_norm gamma/beta (shared slots)
        full((1, D)), full((1, D)),         # post_norm gamma/beta (shared slots)
        full((D, 3 * D)), full((1, 3 * D)), # fused Wqkv, bqkv
        full((D, D)), full((1, D)),         # Wo, bo
        full((D, D)), full((1, D)),         # Wc, bc (condition projection)
        full((1, D)),                       # layer-scale gamma (shared slots)
        full((D, FF)), full((1, FF)),       # W1, b1
        full((FF, D)), full((1, D)),        # W2, b2
    ]

    out_shape = (
        jax.ShapeDtypeStruct((B, L, D), jnp.float32),
        jax.ShapeDtypeStruct((B, L, L), jnp.float32),
    )
    out_specs = (
        pl.BlockSpec((TB, L, D), lambda b: (b, 0, 0)),
        pl.BlockSpec((TB, L, L), lambda b: (b, 0, 0)),
    )

    grid_spec = pltpu.PrefetchScalarGridSpec(
        num_scalar_prefetch=0,
        grid=(B // TB,),
        in_specs=in_specs,
        out_specs=out_specs,
        scratch_shapes=[pltpu.VMEM((TB, L, D), jnp.float32)],  # head-output accum
    )

    return pl.pallas_call(
        kernel,
        out_shape=out_shape,
        grid_spec=grid_spec,
        compiler_params=pltpu.CompilerParams(
            dimension_semantics=("parallel",),
            vmem_limit_bytes=vmem_limit_bytes),
    )(
        inputs.astype(jnp.float32), cond3, mask3,
        pos_q, pos_k,
        row(params["ln_pre_g"]), row(params["ln_pre_b"]),
        row(params["ln_post_g"]), row(params["ln_post_b"]),
        to_mm(wqkv), row(bqkv),
        to_mm(params["wo"]), row(params["bo"]),
        to_mm(params["wc"]), row(params["bc"]),
        row(params["ls_gamma"]),
        to_mm(params["w1"]), row(params["b1"]),
        to_mm(params["w2"]), row(params["b2"]),
    )


def init_params(key, model_dim, dim_feedforward):
    D, FF = model_dim, dim_feedforward
    ks = jax.random.split(key, 8)
    n = lambda k, shape: (0.02 * jax.random.normal(k, shape)).astype(jnp.float32)
    return {
        "ln_pre_g": jnp.ones((D,), jnp.float32),
        "ln_pre_b": jnp.zeros((D,), jnp.float32),
        "ln_post_g": jnp.ones((D,), jnp.float32),
        "ln_post_b": jnp.zeros((D,), jnp.float32),
        "wq": n(ks[0], (D, D)), "bq": jnp.zeros((D,), jnp.float32),
        "wk": n(ks[1], (D, D)), "bk": jnp.zeros((D,), jnp.float32),
        "wv": n(ks[2], (D, D)), "bv": jnp.zeros((D,), jnp.float32),
        "wo": n(ks[3], (D, D)), "bo": jnp.zeros((D,), jnp.float32),
        "wc": n(ks[4], (D, D)), "bc": jnp.zeros((D,), jnp.float32),
        "ls_gamma": jnp.full((D,), 0.1, jnp.float32),
        "w1": n(ks[5], (D, FF)), "b1": jnp.zeros((FF,), jnp.float32),
        "w2": n(ks[6], (FF, D)), "b2": jnp.zeros((D,), jnp.float32),
    }


if __name__ == "__main__":
    B, L, D, H, FF = 2, 8, 32, 4, 64

    key = jax.random.PRNGKey(0)
    k_in, k_cond, k_par = jax.random.split(key, 3)

    inputs = jax.random.normal(k_in, (B, L, D), dtype=jnp.float32)
    condition = jax.random.normal(k_cond, (B, D), dtype=jnp.float32)
    # invalid (True) bit on the last two positions of batch 1
    padding_mask = jnp.zeros((B, L), jnp.float32).at[1, L - 2:].set(1.0)

    params = init_params(k_par, D, FF)

    out, attn_w = condition_encoder_layer(
        inputs, condition, padding_mask, params, head_num=H)
    jax.block_until_ready((out, attn_w))

    assert out.shape == (B, L, D) and attn_w.shape == (B, L, L)
    assert bool(jnp.all(jnp.isfinite(out))) and bool(jnp.all(jnp.isfinite(attn_w)))
    # averaged attention rows should sum to ~1 (approx reciprocal tolerance)
    row_sum = jnp.sum(attn_w[0], axis=-1)
    assert bool(jnp.all(jnp.abs(row_sum - 1.0) < 1e-2))
    print("KERNEL_OK")
</pallas_src>

<mosaic_0001>
module attributes {stable_mosaic.version = 11 : i64} {
  func.func @_cond_encoder_kernel(%arg0: i32, %arg1: memref<1x8x32xf32, #tpu.memory_space<vmem>>, %arg2: memref<1x1x32xf32, #tpu.memory_space<vmem>>, %arg3: memref<1x1x8xf32, #tpu.memory_space<vmem>>, %arg4: memref<8x32xf32, #tpu.memory_space<vmem>>, %arg5: memref<8x32xf32, #tpu.memory_space<vmem>>, %arg6: memref<1x32xf32, #tpu.memory_space<vmem>>, %arg7: memref<1x32xf32, #tpu.memory_space<vmem>>, %arg8: memref<1x32xf32, #tpu.memory_space<vmem>>, %arg9: memref<1x32xf32, #tpu.memory_space<vmem>>, %arg10: memref<32x96xbf16, #tpu.memory_space<vmem>>, %arg11: memref<1x96xf32, #tpu.memory_space<vmem>>, %arg12: memref<32x32xbf16, #tpu.memory_space<vmem>>, %arg13: memref<1x32xf32, #tpu.memory_space<vmem>>, %arg14: memref<32x32xbf16, #tpu.memory_space<vmem>>, %arg15: memref<1x32xf32, #tpu.memory_space<vmem>>, %arg16: memref<1x32xf32, #tpu.memory_space<vmem>>, %arg17: memref<32x64xbf16, #tpu.memory_space<vmem>>, %arg18: memref<1x64xf32, #tpu.memory_space<vmem>>, %arg19: memref<64x32xbf16, #tpu.memory_space<vmem>>, %arg20: memref<1x32xf32, #tpu.memory_space<vmem>>, %arg21: memref<1x8x32xf32, #tpu.memory_space<vmem>>, %arg22: memref<1x8x8xf32, #tpu.memory_space<vmem>>, %arg23: memref<1x8x32xf32, #tpu.memory_space<vmem>>) attributes {dimension_semantics = [#tpu.dimension_semantics<parallel>], iteration_bounds = array<i64: 2>, scalar_prefetch = 0 : i64, scratch_operands = 1 : i64, tpu.core_type = #tpu.core_type<tc>, window_params = [{transform_indices = @transform_0, window_bounds = array<i64: 1, 8, 32>}, {transform_indices = @transform_1, window_bounds = array<i64: 1, 1, 32>}, {transform_indices = @transform_2, window_bounds = array<i64: 1, 1, 8>}, {pipeline_mode = #tpu.pipeline_mode<synchronous>, transform_indices = @transform_3, window_bounds = array<i64: 8, 32>}, {pipeline_mode = #tpu.pipeline_mode<synchronous>, transform_indices = @transform_4, window_bounds = array<i64: 8, 32>}, {pipeline_mode = #tpu.pipeline_mode<synchronous>, transform_indices = @transform_5, window_bounds = array<i64: 1, 32>}, {pipeline_mode = #tpu.pipeline_mode<synchronous>, transform_indices = @transform_6, window_bounds = array<i64: 1, 32>}, {pipeline_mode = #tpu.pipeline_mode<synchronous>, transform_indices = @transform_7, window_bounds = array<i64: 1, 32>}, {pipeline_mode = #tpu.pipeline_mode<synchronous>, transform_indices = @transform_8, window_bounds = array<i64: 1, 32>}, {pipeline_mode = #tpu.pipeline_mode<synchronous>, transform_indices = @transform_9, window_bounds = array<i64: 32, 96>}, {pipeline_mode = #tpu.pipeline_mode<synchronous>, transform_indices = @transform_10, window_bounds = array<i64: 1, 96>}, {pipeline_mode = #tpu.pipeline_mode<synchronous>, transform_indices = @transform_11, window_bounds = array<i64: 32, 32>}, {pipeline_mode = #tpu.pipeline_mode<synchronous>, transform_indices = @transform_12, window_bounds = array<i64: 1, 32>}, {pipeline_mode = #tpu.pipeline_mode<synchronous>, transform_indices = @transform_13, window_bounds = array<i64: 32, 32>}, {pipeline_mode = #tpu.pipeline_mode<synchronous>, transform_indices = @transform_14, window_bounds = array<i64: 1, 32>}, {pipeline_mode = #tpu.pipeline_mode<synchronous>, transform_indices = @transform_15, window_bounds = array<i64: 1, 32>}, {pipeline_mode = #tpu.pipeline_mode<synchronous>, transform_indices = @transform_16, window_bounds = array<i64: 32, 64>}, {pipeline_mode = #tpu.pipeline_mode<synchronous>, transform_indices = @transform_17, window_bounds = array<i64: 1, 64>}, {pipeline_mode = #tpu.pipeline_mode<synchronous>, transform_indices = @transform_18, window_bounds = array<i64: 64, 32>}, {pipeline_mode = #tpu.pipeline_mode<synchronous>, transform_indices = @transform_19, window_bounds = array<i64: 1, 32>}, {transform_indices = @transform_20, window_bounds = array<i64: 1, 8, 32>}, {transform_indices = @transform_21, window_bounds = array<i64: 1, 8, 8>}]} {
    %c0 = arith.constant 0 : index
    %c0_0 = arith.constant 0 : index
    %c0_1 = arith.constant 0 : index
    %0 = vector.load %arg1[%c0, %c0_0, %c0_1] : memref<1x8x32xf32, #tpu.memory_space<vmem>>, vector<1x8x32xf32>
    %1 = vector.shape_cast %0 : vector<1x8x32xf32> to vector<8x32xf32>
    %c0_2 = arith.constant 0 : index
    %c0_3 = arith.constant 0 : index
    %2 = vector.load %arg6[%c0_2, %c0_3] : memref<1x32xf32, #tpu.memory_space<vmem>>, vector<1x32xf32>
    %c0_4 = arith.constant 0 : index
    %c0_5 = arith.constant 0 : index
    %3 = vector.load %arg7[%c0_4, %c0_5] : memref<1x32xf32, #tpu.memory_space<vmem>>, vector<1x32xf32>
    %c0_6 = arith.constant 0 : index
    %c0_7 = arith.constant 0 : index
    %4 = vector.load %arg8[%c0_6, %c0_7] : memref<1x32xf32, #tpu.memory_space<vmem>>, vector<1x32xf32>
    %c0_8 = arith.constant 0 : index
    %c0_9 = arith.constant 0 : index
    %5 = vector.load %arg9[%c0_8, %c0_9] : memref<1x32xf32, #tpu.memory_space<vmem>>, vector<1x32xf32>
    %c0_10 = arith.constant 0 : index
    %c0_11 = arith.constant 0 : index
    %6 = vector.load %arg16[%c0_10, %c0_11] : memref<1x32xf32, #tpu.memory_space<vmem>>, vector<1x32xf32>
    %cst = arith.constant dense<0.000000e+00> : vector<8xf32>
    %7 = vector.multi_reduction <add>, %1, %cst [1] : vector<8x32xf32> to vector<8xf32>
    %8 = vector.shape_cast %7 : vector<8xf32> to vector<8x1xf32>
    %cst_12 = arith.constant 3.200000e+01 : f32
    %9 = vector.broadcast %cst_12 : f32 to vector<8x1xf32>
    %10 = arith.divf %8, %9 : vector<8x1xf32>
    %11 = vector.broadcast %10 : vector<8x1xf32> to vector<8x32xf32>
    %12 = arith.subf %1, %11 : vector<8x32xf32>
    %13 = arith.mulf %12, %12 : vector<8x32xf32>
    %cst_13 = arith.constant dense<0.000000e+00> : vector<8xf32>
    %14 = vector.multi_reduction <add>, %13, %cst_13 [1] : vector<8x32xf32> to vector<8xf32>
    %15 = vector.shape_cast %14 : vector<8xf32> to vector<8x1xf32>
    %cst_14 = arith.constant 3.200000e+01 : f32
    %16 = vector.broadcast %cst_14 : f32 to vector<8x1xf32>
    %17 = arith.divf %15, %16 : vector<8x1xf32>
    %18 = vector.broadcast %10 : vector<8x1xf32> to vector<8x32xf32>
    %19 = arith.subf %1, %18 : vector<8x32xf32>
    %cst_15 = arith.constant 9.99999974E-6 : f32
    %20 = vector.broadcast %cst_15 : f32 to vector<8x1xf32>
    %21 = arith.addf %17, %20 : vector<8x1xf32>
    %22 = math.rsqrt %21 : vector<8x1xf32>
    %23 = vector.broadcast %22 : vector<8x1xf32> to vector<8x32xf32>
    %24 = arith.mulf %19, %23 : vector<8x32xf32>
    %25 = vector.broadcast %2 : vector<1x32xf32> to vector<8x32xf32>
    %26 = arith.mulf %24, %25 : vector<8x32xf32>
    %27 = vector.broadcast %3 : vector<1x32xf32> to vector<8x32xf32>
    %28 = arith.addf %26, %27 : vector<8x32xf32>
    %29 = arith.truncf %28 : vector<8x32xf32> to vector<8x32xbf16>
    %c0_16 = arith.constant 0 : index
    %c0_17 = arith.constant 0 : index
    %30 = vector.load %arg10[%c0_16, %c0_17] : memref<32x96xbf16, #tpu.memory_space<vmem>>, vector<32x96xbf16>
    %cst_18 = arith.constant dense<0.000000e+00> : vector<8x96xf32>
    %31 = tpu.matmul %29, %30, %cst_18 {dimension_numbers = #tpu.dot_dimension_numbers<[1], [0], [0], [1], [0, 0, 1, 1], [], []>} : vector<8x32xbf16>, vector<32x96xbf16>, vector<8x96xf32> -> vector<8x96xf32>
    %c0_19 = arith.constant 0 : index
    %c0_20 = arith.constant 0 : index
    %32 = vector.load %arg11[%c0_19, %c0_20] : memref<1x96xf32, #tpu.memory_space<vmem>>, vector<1x96xf32>
    %33 = vector.broadcast %32 : vector<1x96xf32> to vector<8x96xf32>
    %34 = arith.addf %31, %33 : vector<8x96xf32>
    %35 = vector.shape_cast %34 : vector<8x96xf32> to vector<1x8x96xf32>
    %c0_21 = arith.constant 0 : index
    %c0_22 = arith.constant 0 : index
    %c0_23 = arith.constant 0 : index
    %36 = vector.load %arg2[%c0_21, %c0_22, %c0_23] : memref<1x1x32xf32, #tpu.memory_space<vmem>>, vector<1x1x32xf32>
    %37 = vector.shape_cast %36 : vector<1x1x32xf32> to vector<1x32xf32>
    %38 = arith.truncf %37 : vector<1x32xf32> to vector<1x32xbf16>
    %c0_24 = arith.constant 0 : index
    %c0_25 = arith.constant 0 : index
    %39 = vector.load %arg14[%c0_24, %c0_25] : memref<32x32xbf16, #tpu.memory_space<vmem>>, vector<32x32xbf16>
    %cst_26 = arith.constant dense<0.000000e+00> : vector<1x32xf32>
    %40 = tpu.matmul %38, %39, %cst_26 {dimension_numbers = #tpu.dot_dimension_numbers<[1], [0], [0], [1], [0, 0, 1, 1], [], []>} : vector<1x32xbf16>, vector<32x32xbf16>, vector<1x32xf32> -> vector<1x32xf32>
    %c0_27 = arith.constant 0 : index
    %c0_28 = arith.constant 0 : index
    %41 = vector.load %arg15[%c0_27, %c0_28] : memref<1x32xf32, #tpu.memory_space<vmem>>, vector<1x32xf32>
    %42 = arith.addf %40, %41 : vector<1x32xf32>
    %43 = vector.extract_strided_slice %35 {offsets = [0, 0, 0], sizes = [1, 8, 32], strides = [1, 1, 1]} : vector<1x8x96xf32> to vector<1x8x32xf32>
    %c0_29 = arith.constant 0 : index
    %c0_30 = arith.constant 0 : index
    %44 = vector.load %arg4[%c0_29, %c0_30] : memref<8x32xf32, #tpu.memory_space<vmem>>, vector<8x32xf32>
    %45 = vector.shape_cast %44 : vector<8x32xf32> to vector<1x8x32xf32>
    %46 = arith.addf %43, %45 : vector<1x8x32xf32>
    %cst_31 = arith.constant 0.353553385 : f32
    %47 = vector.broadcast %cst_31 : f32 to vector<1x8x32xf32>
    %48 = arith.mulf %46, %47 : vector<1x8x32xf32>
    %49 = vector.extract_strided_slice %35 {offsets = [0, 0, 32], sizes = [1, 8, 32], strides = [1, 1, 1]} : vector<1x8x96xf32> to vector<1x8x32xf32>
    %c0_32 = arith.constant 0 : index
    %c0_33 = arith.constant 0 : index
    %50 = vector.load %arg5[%c0_32, %c0_33] : memref<8x32xf32, #tpu.memory_space<vmem>>, vector<8x32xf32>
    %51 = vector.shape_cast %50 : vector<8x32xf32> to vector<1x8x32xf32>
    %52 = arith.addf %49, %51 : vector<1x8x32xf32>
    %53 = vector.shape_cast %42 : vector<1x32xf32> to vector<1x1x32xf32>
    %54 = vector.broadcast %53 : vector<1x1x32xf32> to vector<1x8x32xf32>
    %55 = arith.addf %52, %54 : vector<1x8x32xf32>
    %56 = vector.extract_strided_slice %35 {offsets = [0, 0, 64], sizes = [1, 8, 32], strides = [1, 1, 1]} : vector<1x8x96xf32> to vector<1x8x32xf32>
    %57 = arith.truncf %48 : vector<1x8x32xf32> to vector<1x8x32xbf16>
    %58 = arith.truncf %55 : vector<1x8x32xf32> to vector<1x8x32xbf16>
    %59 = arith.truncf %56 : vector<1x8x32xf32> to vector<1x8x32xbf16>
    %c0_34 = arith.constant 0 : index
    %c0_35 = arith.constant 0 : index
    %c0_36 = arith.constant 0 : index
    %60 = vector.load %arg3[%c0_34, %c0_35, %c0_36] : memref<1x1x8xf32, #tpu.memory_space<vmem>>, vector<1x1x8xf32>
    %cst_37 = arith.constant 5.000000e-01 : f32
    %61 = vector.broadcast %cst_37 : f32 to vector<1x1x8xf32>
    %62 = arith.cmpf ogt, %60, %61 : vector<1x1x8xf32>
    %cst_38 = arith.constant -1.000000e+30 : f32
    %cst_39 = arith.constant 0.000000e+00 : f32
    %63 = vector.broadcast %cst_38 : f32 to vector<1x1x8xf32>
    %64 = vector.broadcast %cst_39 : f32 to vector<1x1x8xf32>
    %65 = arith.select %62, %63, %64 : vector<1x1x8xi1>, vector<1x1x8xf32>
    %cst_40 = arith.constant 0.000000e+00 : f32
    %66 = vector.broadcast %cst_40 : f32 to vector<1x8x8xf32>
    %c0_41 = arith.constant 0 : index
    %c0_42 = arith.constant 0 : index
    %c0_43 = arith.constant 0 : index
    %67 = vector.load %arg22[%c0_41, %c0_42, %c0_43] : memref<1x8x8xf32, #tpu.memory_space<vmem>>, vector<1x8x8xf32>
    tpu.vector_store %arg22[%c0_41, %c0_42, %c0_43], %66 {strides = array<i32>} : memref<1x8x8xf32, #tpu.memory_space<vmem>>, vector<1x8x8xf32>,
    %68 = vector.extract_strided_slice %57 {offsets = [0, 0, 0], sizes = [1, 8, 8], strides = [1, 1, 1]} : vector<1x8x32xbf16> to vector<1x8x8xbf16>
    %69 = vector.extract_strided_slice %58 {offsets = [0, 0, 0], sizes = [1, 8, 8], strides = [1, 1, 1]} : vector<1x8x32xbf16> to vector<1x8x8xbf16>
    "tpu.trace_start"() <{level = 10 : i32, message = "bqd,bkd->bqk"}> : () -> ()
    %cst_44 = arith.constant dense<0.000000e+00> : vector<1x8x8xf32>
    %70 = tpu.matmul %68, %69, %cst_44 {dimension_numbers = #tpu.dot_dimension_numbers<[2], [2], [1], [1], [0, 0, 0, 1, 1, 1], [0], [0]>} : vector<1x8x8xbf16>, vector<1x8x8xbf16>, vector<1x8x8xf32> -> vector<1x8x8xf32>
    "tpu.trace_stop"() : () -> ()
    %71 = vector.broadcast %65 : vector<1x1x8xf32> to vector<1x8x8xf32>
    %72 = arith.addf %70, %71 : vector<1x8x8xf32>
    %cst_45 = arith.constant dense<0xFF800000> : vector<1x8xf32>
    %73 = vector.multi_reduction <maximumf>, %72, %cst_45 [2] : vector<1x8x8xf32> to vector<1x8xf32>
    %74 = vector.shape_cast %73 : vector<1x8xf32> to vector<1x8x1xf32>
    %75 = vector.broadcast %74 : vector<1x8x1xf32> to vector<1x8x8xf32>
    %76 = arith.subf %72, %75 : vector<1x8x8xf32>
    %77 = math.exp %76 : vector<1x8x8xf32>
    %cst_46 = arith.constant dense<0.000000e+00> : vector<1x8xf32>
    %78 = vector.multi_reduction <add>, %77, %cst_46 [2] : vector<1x8x8xf32> to vector<1x8xf32>
    %79 = vector.shape_cast %78 : vector<1x8xf32> to vector<1x8x1xf32>
    %80 = tpu.reciprocal %79 {approx = true} : vector<1x8x1xf32> -> vector<1x8x1xf32>
    %81 = vector.broadcast %80 : vector<1x8x1xf32> to vector<1x8x8xf32>
    %82 = arith.mulf %77, %81 : vector<1x8x8xf32>
    %c0_47 = arith.constant 0 : index
    %c0_48 = arith.constant 0 : index
    %c0_49 = arith.constant 0 : index
    %83 = vector.load %arg22[%c0_47, %c0_48, %c0_49] : memref<1x8x8xf32, #tpu.memory_space<vmem>>, vector<1x8x8xf32>
    %84 = arith.addf %83, %82 : vector<1x8x8xf32>
    %c0_50 = arith.constant 0 : index
    %c0_51 = arith.constant 0 : index
    %c0_52 = arith.constant 0 : index
    %85 = vector.load %arg22[%c0_50, %c0_51, %c0_52] : memref<1x8x8xf32, #tpu.memory_space<vmem>>, vector<1x8x8xf32>
    tpu.vector_store %arg22[%c0_50, %c0_51, %c0_52], %84 {strides = array<i32>} : memref<1x8x8xf32, #tpu.memory_space<vmem>>, vector<1x8x8xf32>,
    %86 = arith.truncf %82 : vector<1x8x8xf32> to vector<1x8x8xbf16>
    %87 = vector.extract_strided_slice %59 {offsets = [0, 0, 0], sizes = [1, 8, 8], strides = [1, 1, 1]} : vector<1x8x32xbf16> to vector<1x8x8xbf16>
    "tpu.trace_start"() <{level = 10 : i32, message = "bqk,bkd->bqd"}> : () -> ()
    %cst_53 = arith.constant dense<0.000000e+00> : vector<1x8x8xf32>
    %88 = tpu.matmul %86, %87, %cst_53 {dimension_numbers = #tpu.dot_dimension_numbers<[2], [1], [1], [2], [0, 0, 0, 1, 1, 2], [0], [0]>} : vector<1x8x8xbf16>, vector<1x8x8xbf16>, vector<1x8x8xf32> -> vector<1x8x8xf32>
    "tpu.trace_stop"() : () -> ()
    %c0_54 = arith.constant 0 : index
    %c0_55 = arith.constant 0 : index
    %c0_56 = arith.constant 0 : index
    %89 = vector.load %arg23[%c0_54, %c0_55, %c0_56] : memref<1x8x32xf32, #tpu.memory_space<vmem>>, vector<1x8x8xf32>
    tpu.vector_store %arg23[%c0_54, %c0_55, %c0_56], %88 {strides = array<i32>} : memref<1x8x32xf32, #tpu.memory_space<vmem>>, vector<1x8x8xf32>,
    %90 = vector.extract_strided_slice %57 {offsets = [0, 0, 8], sizes = [1, 8, 8], strides = [1, 1, 1]} : vector<1x8x32xbf16> to vector<1x8x8xbf16>
    %91 = vector.extract_strided_slice %58 {offsets = [0, 0, 8], sizes = [1, 8, 8], strides = [1, 1, 1]} : vector<1x8x32xbf16> to vector<1x8x8xbf16>
    "tpu.trace_start"() <{level = 10 : i32, message = "bqd,bkd->bqk"}> : () -> ()
    %cst_57 = arith.constant dense<0.000000e+00> : vector<1x8x8xf32>
    %92 = tpu.matmul %90, %91, %cst_57 {dimension_numbers = #tpu.dot_dimension_numbers<[2], [2], [1], [1], [0, 0, 0, 1, 1, 1], [0], [0]>} : vector<1x8x8xbf16>, vector<1x8x8xbf16>, vector<1x8x8xf32> -> vector<1x8x8xf32>
    "tpu.trace_stop"() : () -> ()
    %93 = vector.broadcast %65 : vector<1x1x8xf32> to vector<1x8x8xf32>
    %94 = arith.addf %92, %93 : vector<1x8x8xf32>
    %cst_58 = arith.constant dense<0xFF800000> : vector<1x8xf32>
    %95 = vector.multi_reduction <maximumf>, %94, %cst_58 [2] : vector<1x8x8xf32> to vector<1x8xf32>
    %96 = vector.shape_cast %95 : vector<1x8xf32> to vector<1x8x1xf32>
    %97 = vector.broadcast %96 : vector<1x8x1xf32> to vector<1x8x8xf32>
    %98 = arith.subf %94, %97 : vector<1x8x8xf32>
    %99 = math.exp %98 : vector<1x8x8xf32>
    %cst_59 = arith.constant dense<0.000000e+00> : vector<1x8xf32>
    %100 = vector.multi_reduction <add>, %99, %cst_59 [2] : vector<1x8x8xf32> to vector<1x8xf32>
    %101 = vector.shape_cast %100 : vector<1x8xf32> to vector<1x8x1xf32>
    %102 = tpu.reciprocal %101 {approx = true} : vector<1x8x1xf32> -> vector<1x8x1xf32>
    %103 = vector.broadcast %102 : vector<1x8x1xf32> to vector<1x8x8xf32>
    %104 = arith.mulf %99, %103 : vector<1x8x8xf32>
    %c0_60 = arith.constant 0 : index
    %c0_61 = arith.constant 0 : index
    %c0_62 = arith.constant 0 : index
    %105 = vector.load %arg22[%c0_60, %c0_61, %c0_62] : memref<1x8x8xf32, #tpu.memory_space<vmem>>, vector<1x8x8xf32>
    %106 = arith.addf %105, %104 : vector<1x8x8xf32>
    %c0_63 = arith.constant 0 : index
    %c0_64 = arith.constant 0 : index
    %c0_65 = arith.constant 0 : index
    %107 = vector.load %arg22[%c0_63, %c0_64, %c0_65] : memref<1x8x8xf32, #tpu.memory_space<vmem>>, vector<1x8x8xf32>
    tpu.vector_store %arg22[%c0_63, %c0_64, %c0_65], %106 {strides = array<i32>} : memref<1x8x8xf32, #tpu.memory_space<vmem>>, vector<1x8x8xf32>,
    %108 = arith.truncf %104 : vector<1x8x8xf32> to vector<1x8x8xbf16>
    %109 = vector.extract_strided_slice %59 {offsets = [0, 0, 8], sizes = [1, 8, 8], strides = [1, 1, 1]} : vector<1x8x32xbf16> to vector<1x8x8xbf16>
    "tpu.trace_start"() <{level = 10 : i32, message = "bqk,bkd->bqd"}> : () -> ()
    %cst_66 = arith.constant dense<0.000000e+00> : vector<1x8x8xf32>
    %110 = tpu.matmul %108, %109, %cst_66 {dimension_numbers = #tpu.dot_dimension_numbers<[2], [1], [1], [2], [0, 0, 0, 1, 1, 2], [0], [0]>} : vector<1x8x8xbf16>, vector<1x8x8xbf16>, vector<1x8x8xf32> -> vector<1x8x8xf32>
    "tpu.trace_stop"() : () -> ()
    %c0_67 = arith.constant 0 : index
    %c0_68 = arith.constant 0 : index
    %c8 = arith.constant 8 : index
    %111 = vector.load %arg23[%c0_67, %c0_68, %c8] : memref<1x8x32xf32, #tpu.memory_space<vmem>>, vector<1x8x8xf32>
    tpu.vector_store %arg23[%c0_67, %c0_68, %c8], %110 {strides = array<i32>} : memref<1x8x32xf32, #tpu.memory_space<vmem>>, vector<1x8x8xf32>,
    %112 = vector.extract_strided_slice %57 {offsets = [0, 0, 16], sizes = [1, 8, 8], strides = [1, 1, 1]} : vector<1x8x32xbf16> to vector<1x8x8xbf16>
    %113 = vector.extract_strided_slice %58 {offsets = [0, 0, 16], sizes = [1, 8, 8], strides = [1, 1, 1]} : vector<1x8x32xbf16> to vector<1x8x8xbf16>
    "tpu.trace_start"() <{level = 10 : i32, message = "bqd,bkd->bqk"}> : () -> ()
    %cst_69 = arith.constant dense<0.000000e+00> : vector<1x8x8xf32>
    %114 = tpu.matmul %112, %113, %cst_69 {dimension_numbers = #tpu.dot_dimension_numbers<[2], [2], [1], [1], [0, 0, 0, 1, 1, 1], [0], [0]>} : vector<1x8x8xbf16>, vector<1x8x8xbf16>, vector<1x8x8xf32> -> vector<1x8x8xf32>
    "tpu.trace_stop"() : () -> ()
    %115 = vector.broadcast %65 : vector<1x1x8xf32> to vector<1x8x8xf32>
    %116 = arith.addf %114, %115 : vector<1x8x8xf32>
    %cst_70 = arith.constant dense<0xFF800000> : vector<1x8xf32>
    %117 = vector.multi_reduction <maximumf>, %116, %cst_70 [2] : vector<1x8x8xf32> to vector<1x8xf32>
    %118 = vector.shape_cast %117 : vector<1x8xf32> to vector<1x8x1xf32>
    %119 = vector.broadcast %118 : vector<1x8x1xf32> to vector<1x8x8xf32>
    %120 = arith.subf %116, %119 : vector<1x8x8xf32>
    %121 = math.exp %120 : vector<1x8x8xf32>
    %cst_71 = arith.constant dense<0.000000e+00> : vector<1x8xf32>
    %122 = vector.multi_reduction <add>, %121, %cst_71 [2] : vector<1x8x8xf32> to vector<1x8xf32>
    %123 = vector.shape_cast %122 : vector<1x8xf32> to vector<1x8x1xf32>
    %124 = tpu.reciprocal %123 {approx = true} : vector<1x8x1xf32> -> vector<1x8x1xf32>
    %125 = vector.broadcast %124 : vector<1x8x1xf32> to vector<1x8x8xf32>
    %126 = arith.mulf %121, %125 : vector<1x8x8xf32>
    %c0_72 = arith.constant 0 : index
    %c0_73 = arith.constant 0 : index
    %c0_74 = arith.constant 0 : index
    %127 = vector.load %arg22[%c0_72, %c0_73, %c0_74] : memref<1x8x8xf32, #tpu.memory_space<vmem>>, vector<1x8x8xf32>
    %128 = arith.addf %127, %126 : vector<1x8x8xf32>
    %c0_75 = arith.constant 0 : index
    %c0_76 = arith.constant 0 : index
    %c0_77 = arith.constant 0 : index
    %129 = vector.load %arg22[%c0_75, %c0_76, %c0_77] : memref<1x8x8xf32, #tpu.memory_space<vmem>>, vector<1x8x8xf32>
    tpu.vector_store %arg22[%c0_75, %c0_76, %c0_77], %128 {strides = array<i32>} : memref<1x8x8xf32, #tpu.memory_space<vmem>>, vector<1x8x8xf32>,
    %130 = arith.truncf %126 : vector<1x8x8xf32> to vector<1x8x8xbf16>
    %131 = vector.extract_strided_slice %59 {offsets = [0, 0, 16], sizes = [1, 8, 8], strides = [1, 1, 1]} : vector<1x8x32xbf16> to vector<1x8x8xbf16>
    "tpu.trace_start"() <{level = 10 : i32, message = "bqk,bkd->bqd"}> : () -> ()
    %cst_78 = arith.constant dense<0.000000e+00> : vector<1x8x8xf32>
    %132 = tpu.matmul %130, %131, %cst_78 {dimension_numbers = #tpu.dot_dimension_numbers<[2], [1], [1], [2], [0, 0, 0, 1, 1, 2], [0], [0]>} : vector<1x8x8xbf16>, vector<1x8x8xbf16>, vector<1x8x8xf32> -> vector<1x8x8xf32>
    "tpu.trace_stop"() : () -> ()
    %c0_79 = arith.constant 0 : index
    %c0_80 = arith.constant 0 : index
    %c16 = arith.constant 16 : index
    %133 = vector.load %arg23[%c0_79, %c0_80, %c16] : memref<1x8x32xf32, #tpu.memory_space<vmem>>, vector<1x8x8xf32>
    tpu.vector_store %arg23[%c0_79, %c0_80, %c16], %132 {strides = array<i32>} : memref<1x8x32xf32, #tpu.memory_space<vmem>>, vector<1x8x8xf32>,
    %134 = vector.extract_strided_slice %57 {offsets = [0, 0, 24], sizes = [1, 8, 8], strides = [1, 1, 1]} : vector<1x8x32xbf16> to vector<1x8x8xbf16>
    %135 = vector.extract_strided_slice %58 {offsets = [0, 0, 24], sizes = [1, 8, 8], strides = [1, 1, 1]} : vector<1x8x32xbf16> to vector<1x8x8xbf16>
    "tpu.trace_start"() <{level = 10 : i32, message = "bqd,bkd->bqk"}> : () -> ()
    %cst_81 = arith.constant dense<0.000000e+00> : vector<1x8x8xf32>
    %136 = tpu.matmul %134, %135, %cst_81 {dimension_numbers = #tpu.dot_dimension_numbers<[2], [2], [1], [1], [0, 0, 0, 1, 1, 1], [0], [0]>} : vector<1x8x8xbf16>, vector<1x8x8xbf16>, vector<1x8x8xf32> -> vector<1x8x8xf32>
    "tpu.trace_stop"() : () -> ()
    %137 = vector.broadcast %65 : vector<1x1x8xf32> to vector<1x8x8xf32>
    %138 = arith.addf %136, %137 : vector<1x8x8xf32>
    %cst_82 = arith.constant dense<0xFF800000> : vector<1x8xf32>
    %139 = vector.multi_reduction <maximumf>, %138, %cst_82 [2] : vector<1x8x8xf32> to vector<1x8xf32>
    %140 = vector.shape_cast %139 : vector<1x8xf32> to vector<1x8x1xf32>
    %141 = vector.broadcast %140 : vector<1x8x1xf32> to vector<1x8x8xf32>
    %142 = arith.subf %138, %141 : vector<1x8x8xf32>
    %143 = math.exp %142 : vector<1x8x8xf32>
    %cst_83 = arith.constant dense<0.000000e+00> : vector<1x8xf32>
    %144 = vector.multi_reduction <add>, %143, %cst_83 [2] : vector<1x8x8xf32> to vector<1x8xf32>
    %145 = vector.shape_cast %144 : vector<1x8xf32> to vector<1x8x1xf32>
    %146 = tpu.reciprocal %145 {approx = true} : vector<1x8x1xf32> -> vector<1x8x1xf32>
    %147 = vector.broadcast %146 : vector<1x8x1xf32> to vector<1x8x8xf32>
    %148 = arith.mulf %143, %147 : vector<1x8x8xf32>
    %c0_84 = arith.constant 0 : index
    %c0_85 = arith.constant 0 : index
    %c0_86 = arith.constant 0 : index
    %149 = vector.load %arg22[%c0_84, %c0_85, %c0_86] : memref<1x8x8xf32, #tpu.memory_space<vmem>>, vector<1x8x8xf32>
    %150 = arith.addf %149, %148 : vector<1x8x8xf32>
    %c0_87 = arith.constant 0 : index
    %c0_88 = arith.constant 0 : index
    %c0_89 = arith.constant 0 : index
    %151 = vector.load %arg22[%c0_87, %c0_88, %c0_89] : memref<1x8x8xf32, #tpu.memory_space<vmem>>, vector<1x8x8xf32>
    tpu.vector_store %arg22[%c0_87, %c0_88, %c0_89], %150 {strides = array<i32>} : memref<1x8x8xf32, #tpu.memory_space<vmem>>, vector<1x8x8xf32>,
    %152 = arith.truncf %148 : vector<1x8x8xf32> to vector<1x8x8xbf16>
    %153 = vector.extract_strided_slice %59 {offsets = [0, 0, 24], sizes = [1, 8, 8], strides = [1, 1, 1]} : vector<1x8x32xbf16> to vector<1x8x8xbf16>
    "tpu.trace_start"() <{level = 10 : i32, message = "bqk,bkd->bqd"}> : () -> ()
    %cst_90 = arith.constant dense<0.000000e+00> : vector<1x8x8xf32>
    %154 = tpu.matmul %152, %153, %cst_90 {dimension_numbers = #tpu.dot_dimension_numbers<[2], [1], [1], [2], [0, 0, 0, 1, 1, 2], [0], [0]>} : vector<1x8x8xbf16>, vector<1x8x8xbf16>, vector<1x8x8xf32> -> vector<1x8x8xf32>
    "tpu.trace_stop"() : () -> ()
    %c0_91 = arith.constant 0 : index
    %c0_92 = arith.constant 0 : index
    %c24 = arith.constant 24 : index
    %155 = vector.load %arg23[%c0_91, %c0_92, %c24] : memref<1x8x32xf32, #tpu.memory_space<vmem>>, vector<1x8x8xf32>
    tpu.vector_store %arg23[%c0_91, %c0_92, %c24], %154 {strides = array<i32>} : memref<1x8x32xf32, #tpu.memory_space<vmem>>, vector<1x8x8xf32>,
    %c0_93 = arith.constant 0 : index
    %c0_94 = arith.constant 0 : index
    %c0_95 = arith.constant 0 : index
    %156 = vector.load %arg22[%c0_93, %c0_94, %c0_95] : memref<1x8x8xf32, #tpu.memory_space<vmem>>, vector<1x8x8xf32>
    %cst_96 = arith.constant 2.500000e-01 : f32
    %157 = vector.broadcast %cst_96 : f32 to vector<1x8x8xf32>
    %158 = arith.mulf %156, %157 : vector<1x8x8xf32>
    %c0_97 = arith.constant 0 : index
    %c0_98 = arith.constant 0 : index
    %c0_99 = arith.constant 0 : index
    %159 = vector.load %arg22[%c0_97, %c0_98, %c0_99] : memref<1x8x8xf32, #tpu.memory_space<vmem>>, vector<1x8x8xf32>
    tpu.vector_store %arg22[%c0_97, %c0_98, %c0_99], %158 {strides = array<i32>} : memref<1x8x8xf32, #tpu.memory_space<vmem>>, vector<1x8x8xf32>,
    %c0_100 = arith.constant 0 : index
    %c0_101 = arith.constant 0 : index
    %c0_102 = arith.constant 0 : index
    %160 = vector.load %arg23[%c0_100, %c0_101, %c0_102] : memref<1x8x32xf32, #tpu.memory_space<vmem>>, vector<1x8x32xf32>
    %161 = vector.shape_cast %160 : vector<1x8x32xf32> to vector<8x32xf32>
    %162 = arith.truncf %161 : vector<8x32xf32> to vector<8x32xbf16>
    %c0_103 = arith.constant 0 : index
    %c0_104 = arith.constant 0 : index
    %163 = vector.load %arg12[%c0_103, %c0_104] : memref<32x32xbf16, #tpu.memory_space<vmem>>, vector<32x32xbf16>
    %cst_105 = arith.constant dense<0.000000e+00> : vector<8x32xf32>
    %164 = tpu.matmul %162, %163, %cst_105 {dimension_numbers = #tpu.dot_dimension_numbers<[1], [0], [0], [1], [0, 0, 1, 1], [], []>} : vector<8x32xbf16>, vector<32x32xbf16>, vector<8x32xf32> -> vector<8x32xf32>
    %c0_106 = arith.constant 0 : index
    %c0_107 = arith.constant 0 : index
    %165 = vector.load %arg13[%c0_106, %c0_107] : memref<1x32xf32, #tpu.memory_space<vmem>>, vector<1x32xf32>
    %166 = vector.broadcast %165 : vector<1x32xf32> to vector<8x32xf32>
    %167 = arith.addf %164, %166 : vector<8x32xf32>
    %cst_108 = arith.constant dense<0.000000e+00> : vector<8xf32>
    %168 = vector.multi_reduction <add>, %167, %cst_108 [1] : vector<8x32xf32> to vector<8xf32>
    %169 = vector.shape_cast %168 : vector<8xf32> to vector<8x1xf32>
    %cst_109 = arith.constant 3.200000e+01 : f32
    %170 = vector.broadcast %cst_109 : f32 to vector<8x1xf32>
    %171 = arith.divf %169, %170 : vector<8x1xf32>
    %172 = vector.broadcast %171 : vector<8x1xf32> to vector<8x32xf32>
    %173 = arith.subf %167, %172 : vector<8x32xf32>
    %174 = arith.mulf %173, %173 : vector<8x32xf32>
    %cst_110 = arith.constant dense<0.000000e+00> : vector<8xf32>
    %175 = vector.multi_reduction <add>, %174, %cst_110 [1] : vector<8x32xf32> to vector<8xf32>
    %176 = vector.shape_cast %175 : vector<8xf32> to vector<8x1xf32>
    %cst_111 = arith.constant 3.200000e+01 : f32
    %177 = vector.broadcast %cst_111 : f32 to vector<8x1xf32>
    %178 = arith.divf %176, %177 : vector<8x1xf32>
    %179 = vector.broadcast %171 : vector<8x1xf32> to vector<8x32xf32>
    %180 = arith.subf %167, %179 : vector<8x32xf32>
    %cst_112 = arith.constant 9.99999974E-6 : f32
    %181 = vector.broadcast %cst_112 : f32 to vector<8x1xf32>
    %182 = arith.addf %178, %181 : vector<8x1xf32>
    %183 = math.rsqrt %182 : vector<8x1xf32>
    %184 = vector.broadcast %183 : vector<8x1xf32> to vector<8x32xf32>
    %185 = arith.mulf %180, %184 : vector<8x32xf32>
    %186 = vector.broadcast %4 : vector<1x32xf32> to vector<8x32xf32>
    %187 = arith.mulf %185, %186 : vector<8x32xf32>
    %188 = vector.broadcast %5 : vector<1x32xf32> to vector<8x32xf32>
    %189 = arith.addf %187, %188 : vector<8x32xf32>
    %190 = vector.broadcast %6 : vector<1x32xf32> to vector<8x32xf32>
    %191 = arith.mulf %190, %189 : vector<8x32xf32>
    %192 = arith.addf %1, %191 : vector<8x32xf32>
    %cst_113 = arith.constant dense<0.000000e+00> : vector<8xf32>
    %193 = vector.multi_reduction <add>, %192, %cst_113 [1] : vector<8x32xf32> to vector<8xf32>
    %194 = vector.shape_cast %193 : vector<8xf32> to vector<8x1xf32>
    %cst_114 = arith.constant 3.200000e+01 : f32
    %195 = vector.broadcast %cst_114 : f32 to vector<8x1xf32>
    %196 = arith.divf %194, %195 : vector<8x1xf32>
    %197 = vector.broadcast %196 : vector<8x1xf32> to vector<8x32xf32>
    %198 = arith.subf %192, %197 : vector<8x32xf32>
    %199 = arith.mulf %198, %198 : vector<8x32xf32>
    %cst_115 = arith.constant dense<0.000000e+00> : vector<8xf32>
    %200 = vector.multi_reduction <add>, %199, %cst_115 [1] : vector<8x32xf32> to vector<8xf32>
    %201 = vector.shape_cast %200 : vector<8xf32> to vector<8x1xf32>
    %cst_116 = arith.constant 3.200000e+01 : f32
    %202 = vector.broadcast %cst_116 : f32 to vector<8x1xf32>
    %203 = arith.divf %201, %202 : vector<8x1xf32>
    %204 = vector.broadcast %196 : vector<8x1xf32> to vector<8x32xf32>
    %205 = arith.subf %192, %204 : vector<8x32xf32>
    %cst_117 = arith.constant 9.99999974E-6 : f32
    %206 = vector.broadcast %cst_117 : f32 to vector<8x1xf32>
    %207 = arith.addf %203, %206 : vector<8x1xf32>
    %208 = math.rsqrt %207 : vector<8x1xf32>
    %209 = vector.broadcast %208 : vector<8x1xf32> to vector<8x32xf32>
    %210 = arith.mulf %205, %209 : vector<8x32xf32>
    %211 = vector.broadcast %2 : vector<1x32xf32> to vector<8x32xf32>
    %212 = arith.mulf %210, %211 : vector<8x32xf32>
    %213 = vector.broadcast %3 : vector<1x32xf32> to vector<8x32xf32>
    %214 = arith.addf %212, %213 : vector<8x32xf32>
    %215 = arith.truncf %214 : vector<8x32xf32> to vector<8x32xbf16>
    %c0_118 = arith.constant 0 : index
    %c0_119 = arith.constant 0 : index
    %216 = vector.load %arg17[%c0_118, %c0_119] : memref<32x64xbf16, #tpu.memory_space<vmem>>, vector<32x64xbf16>
    %cst_120 = arith.constant dense<0.000000e+00> : vector<8x64xf32>
    %217 = tpu.matmul %215, %216, %cst_120 {dimension_numbers = #tpu.dot_dimension_numbers<[1], [0], [0], [1], [0, 0, 1, 1], [], []>} : vector<8x32xbf16>, vector<32x64xbf16>, vector<8x64xf32> -> vector<8x64xf32>
    %c0_121 = arith.constant 0 : index
    %c0_122 = arith.constant 0 : index
    %218 = vector.load %arg18[%c0_121, %c0_122] : memref<1x64xf32, #tpu.memory_space<vmem>>, vector<1x64xf32>
    %219 = vector.broadcast %218 : vector<1x64xf32> to vector<8x64xf32>
    %220 = arith.addf %217, %219 : vector<8x64xf32>
    %cst_123 = arith.constant 0.000000e+00 : f32
    %221 = vector.broadcast %cst_123 : f32 to vector<8x64xf32>
    %222 = arith.maximumf %220, %221 : vector<8x64xf32>
    %223 = arith.truncf %222 : vector<8x64xf32> to vector<8x64xbf16>
    %c0_124 = arith.constant 0 : index
    %c0_125 = arith.constant 0 : index
    %224 = vector.load %arg19[%c0_124, %c0_125] : memref<64x32xbf16, #tpu.memory_space<vmem>>, vector<64x32xbf16>
    %cst_126 = arith.constant dense<0.000000e+00> : vector<8x32xf32>
    %225 = tpu.matmul %223, %224, %cst_126 {dimension_numbers = #tpu.dot_dimension_numbers<[1], [0], [0], [1], [0, 0, 1, 1], [], []>} : vector<8x64xbf16>, vector<64x32xbf16>, vector<8x32xf32> -> vector<8x32xf32>
    %c0_127 = arith.constant 0 : index
    %c0_128 = arith.constant 0 : index
    %226 = vector.load %arg20[%c0_127, %c0_128] : memref<1x32xf32, #tpu.memory_space<vmem>>, vector<1x32xf32>
    %227 = vector.broadcast %226 : vector<1x32xf32> to vector<8x32xf32>
    %228 = arith.addf %225, %227 : vector<8x32xf32>
    %cst_129 = arith.constant dense<0.000000e+00> : vector<8xf32>
    %229 = vector.multi_reduction <add>, %228, %cst_129 [1] : vector<8x32xf32> to vector<8xf32>
    %230 = vector.shape_cast %229 : vector<8xf32> to vector<8x1xf32>
    %cst_130 = arith.constant 3.200000e+01 : f32
    %231 = vector.broadcast %cst_130 : f32 to vector<8x1xf32>
    %232 = arith.divf %230, %231 : vector<8x1xf32>
    %233 = vector.broadcast %232 : vector<8x1xf32> to vector<8x32xf32>
    %234 = arith.subf %228, %233 : vector<8x32xf32>
    %235 = arith.mulf %234, %234 : vector<8x32xf32>
    %cst_131 = arith.constant dense<0.000000e+00> : vector<8xf32>
    %236 = vector.multi_reduction <add>, %235, %cst_131 [1] : vector<8x32xf32> to vector<8xf32>
    %237 = vector.shape_cast %236 : vector<8xf32> to vector<8x1xf32>
    %cst_132 = arith.constant 3.200000e+01 : f32
    %238 = vector.broadcast %cst_132 : f32 to vector<8x1xf32>
    %239 = arith.divf %237, %238 : vector<8x1xf32>
    %240 = vector.broadcast %232 : vector<8x1xf32> to vector<8x32xf32>
    %241 = arith.subf %228, %240 : vector<8x32xf32>
    %cst_133 = arith.constant 9.99999974E-6 : f32
    %242 = vector.broadcast %cst_133 : f32 to vector<8x1xf32>
    %243 = arith.addf %239, %242 : vector<8x1xf32>
    %244 = math.rsqrt %243 : vector<8x1xf32>
    %245 = vector.broadcast %244 : vector<8x1xf32> to vector<8x32xf32>
    %246 = arith.mulf %241, %245 : vector<8x32xf32>
    %247 = vector.broadcast %4 : vector<1x32xf32> to vector<8x32xf32>
    %248 = arith.mulf %246, %247 : vector<8x32xf32>
    %249 = vector.broadcast %5 : vector<1x32xf32> to vector<8x32xf32>
    %250 = arith.addf %248, %249 : vector<8x32xf32>
    %251 = vector.broadcast %6 : vector<1x32xf32> to vector<8x32xf32>
    %252 = arith.mulf %251, %250 : vector<8x32xf32>
    %253 = arith.addf %192, %252 : vector<8x32xf32>
    %254 = vector.shape_cast %253 : vector<8x32xf32> to vector<1x8x32xf32>
    %c0_134 = arith.constant 0 : index
    %c0_135 = arith.constant 0 : index
    %c0_136 = arith.constant 0 : index
    %255 = vector.load %arg21[%c0_134, %c0_135, %c0_136] : memref<1x8x32xf32, #tpu.memory_space<vmem>>, vector<1x8x32xf32>
    tpu.vector_store %arg21[%c0_134, %c0_135, %c0_136], %254 {strides = array<i32>} : memref<1x8x32xf32, #tpu.memory_space<vmem>>, vector<1x8x32xf32>,
    return
  }
  func.func @transform_0(%arg0: i32) -> (i32, i32, i32) {
    %c0_i32 = arith.constant 0 : i32
    %c0_i32_0 = arith.constant 0 : i32
    %c0_i32_1 = arith.constant 0 : i32
    return %arg0, %c0_i32, %c0_i32_0 : i32, i32, i32
  }
  func.func @transform_1(%arg0: i32) -> (i32, i32, i32) {
    %c0_i32 = arith.constant 0 : i32
    %c0_i32_0 = arith.constant 0 : i32
    %c0_i32_1 = arith.constant 0 : i32
    return %arg0, %c0_i32, %c0_i32_0 : i32, i32, i32
  }
  func.func @transform_2(%arg0: i32) -> (i32, i32, i32) {
    %c0_i32 = arith.constant 0 : i32
    %c0_i32_0 = arith.constant 0 : i32
    %c0_i32_1 = arith.constant 0 : i32
    return %arg0, %c0_i32, %c0_i32_0 : i32, i32, i32
  }
  func.func @transform_3(%arg0: i32) -> (i32, i32) {
    %c0_i32 = arith.constant 0 : i32
    %c0_i32_0 = arith.constant 0 : i32
    %c0_i32_1 = arith.constant 0 : i32
    return %c0_i32, %c0_i32_0 : i32, i32
  }
  func.func @transform_4(%arg0: i32) -> (i32, i32) {
    %c0_i32 = arith.constant 0 : i32
    %c0_i32_0 = arith.constant 0 : i32
    %c0_i32_1 = arith.constant 0 : i32
    return %c0_i32, %c0_i32_0 : i32, i32
  }
  func.func @transform_5(%arg0: i32) -> (i32, i32) {
    %c0_i32 = arith.constant 0 : i32
    %c0_i32_0 = arith.constant 0 : i32
    %c0_i32_1 = arith.constant 0 : i32
    return %c0_i32, %c0_i32_0 : i32, i32
  }
  func.func @transform_6(%arg0: i32) -> (i32, i32) {
    %c0_i32 = arith.constant 0 : i32
    %c0_i32_0 = arith.constant 0 : i32
    %c0_i32_1 = arith.constant 0 : i32
    return %c0_i32, %c0_i32_0 : i32, i32
  }
  func.func @transform_7(%arg0: i32) -> (i32, i32) {
    %c0_i32 = arith.constant 0 : i32
    %c0_i32_0 = arith.constant 0 : i32
    %c0_i32_1 = arith.constant 0 : i32
    return %c0_i32, %c0_i32_0 : i32, i32
  }
  func.func @transform_8(%arg0: i32) -> (i32, i32) {
    %c0_i32 = arith.constant 0 : i32
    %c0_i32_0 = arith.constant 0 : i32
    %c0_i32_1 = arith.constant 0 : i32
    return %c0_i32, %c0_i32_0 : i32, i32
  }
  func.func @transform_9(%arg0: i32) -> (i32, i32) {
    %c0_i32 = arith.constant 0 : i32
    %c0_i32_0 = arith.constant 0 : i32
    %c0_i32_1 = arith.constant 0 : i32
    return %c0_i32, %c0_i32_0 : i32, i32
  }
  func.func @transform_10(%arg0: i32) -> (i32, i32) {
    %c0_i32 = arith.constant 0 : i32
    %c0_i32_0 = arith.constant 0 : i32
    %c0_i32_1 = arith.constant 0 : i32
    return %c0_i32, %c0_i32_0 : i32, i32
  }
  func.func @transform_11(%arg0: i32) -> (i32, i32) {
    %c0_i32 = arith.constant 0 : i32
    %c0_i32_0 = arith.constant 0 : i32
    %c0_i32_1 = arith.constant 0 : i32
    return %c0_i32, %c0_i32_0 : i32, i32
  }
  func.func @transform_12(%arg0: i32) -> (i32, i32) {
    %c0_i32 = arith.constant 0 : i32
    %c0_i32_0 = arith.constant 0 : i32
    %c0_i32_1 = arith.constant 0 : i32
    return %c0_i32, %c0_i32_0 : i32, i32
  }
  func.func @transform_13(%arg0: i32) -> (i32, i32) {
    %c0_i32 = arith.constant 0 : i32
    %c0_i32_0 = arith.constant 0 : i32
    %c0_i32_1 = arith.constant 0 : i32
    return %c0_i32, %c0_i32_0 : i32, i32
  }
  func.func @transform_14(%arg0: i32) -> (i32, i32) {
    %c0_i32 = arith.constant 0 : i32
    %c0_i32_0 = arith.constant 0 : i32
    %c0_i32_1 = arith.constant 0 : i32
    return %c0_i32, %c0_i32_0 : i32, i32
  }
  func.func @transform_15(%arg0: i32) -> (i32, i32) {
    %c0_i32 = arith.constant 0 : i32
    %c0_i32_0 = arith.constant 0 : i32
    %c0_i32_1 = arith.constant 0 : i32
    return %c0_i32, %c0_i32_0 : i32, i32
  }
  func.func @transform_16(%arg0: i32) -> (i32, i32) {
    %c0_i32 = arith.constant 0 : i32
    %c0_i32_0 = arith.constant 0 : i32
    %c0_i32_1 = arith.constant 0 : i32
    return %c0_i32, %c0_i32_0 : i32, i32
  }
  func.func @transform_17(%arg0: i32) -> (i32, i32) {
    %c0_i32 = arith.constant 0 : i32
    %c0_i32_0 = arith.constant 0 : i32
    %c0_i32_1 = arith.constant 0 : i32
    return %c0_i32, %c0_i32_0 : i32, i32
  }
  func.func @transform_18(%arg0: i32) -> (i32, i32) {
    %c0_i32 = arith.constant 0 : i32
    %c0_i32_0 = arith.constant 0 : i32
    %c0_i32_1 = arith.constant 0 : i32
    return %c0_i32, %c0_i32_0 : i32, i32
  }
  func.func @transform_19(%arg0: i32) -> (i32, i32) {
    %c0_i32 = arith.constant 0 : i32
    %c0_i32_0 = arith.constant 0 : i32
    %c0_i32_1 = arith.constant 0 : i32
    return %c0_i32, %c0_i32_0 : i32, i32
  }
  func.func @transform_20(%arg0: i32) -> (i32, i32, i32) {
    %c0_i32 = arith.constant 0 : i32
    %c0_i32_0 = arith.constant 0 : i32
    %c0_i32_1 = arith.constant 0 : i32
    return %arg0, %c0_i32, %c0_i32_0 : i32, i32, i32
  }
  func.func @transform_21(%arg0: i32) -> (i32, i32, i32) {
    %c0_i32 = arith.constant 0 : i32
    %c0_i32_0 = arith.constant 0 : i32
    %c0_i32_1 = arith.constant 0 : i32
    return %arg0, %c0_i32, %c0_i32_0 : i32, i32, i32
  }
}

</mosaic_0001>

<bundles_post_ra>
// kernel: tpu_custom_call.1
= control target key start
LH: loop header
LB: loop body
LE: loop exit
PB: predicated region body
PF: predicated region fallthrough
CT: control target
= control target key end

     0   :  { %s3515_s0 = inlined_call_operand.vmem [shape: f32[2,8,32], index: 0, kind: input, shape index: {}]   ;;  %s3516_s1 = inlined_call_operand.hbm [shape: f32[2,1,32], index: 1, kind: input, shape index: {}]   ;;  %s3517_s2 = inlined_call_operand.hbm [shape: f32[2,1,8], index: 2, kind: input, shape index: {}]   ;;  %s3518_s3 = inlined_call_operand.hbm [shape: f32[8,32], index: 3, kind: input, shape index: {}]   ;;  %s3519_s4 = inlined_call_operand.hbm [shape: f32[8,32], index: 4, kind: input, shape index: {}]   ;;  %s3520_s5 = inlined_call_operand.vmem [shape: f32[1,32], index: 5, kind: input, shape index: {}]   ;;  %s3521_s6 = inlined_call_operand.hbm [shape: f32[1,32], index: 6, kind: input, shape index: {}]   ;;  %s3522_s7 = inlined_call_operand.hbm [shape: f32[1,32], index: 7, kind: input, shape index: {}]   ;;  %s3523_s8 = inlined_call_operand.hbm [shape: f32[1,32], index: 8, kind: input, shape index: {}]   ;;  %s3524_s9 = inlined_call_operand.vmem [shape: bf16[32,96], index: 9, kind: input, shape index: {}]   ;;  %s3525_s10 = inlined_call_operand.hbm [shape: f32[1,96], index: 10, kind: input, shape index: {}]   ;;  %s3526_s11 = inlined_call_operand.vmem [shape: bf16[32,32], index: 11, kind: input, shape index: {}]   ;;  %s3527_s12 = inlined_call_operand.hbm [shape: f32[1,32], index: 12, kind: input, shape index: {}]   ;;  %s3528_s13 = inlined_call_operand.vmem [shape: bf16[32,32], index: 13, kind: input, shape index: {}]   ;;  %s3529_s14 = inlined_call_operand.vmem [shape: f32[1,32], index: 14, kind: input, shape index: {}]   ;;  %s3530_s15 = inlined_call_operand.vmem [shape: f32[1,32], index: 15, kind: input, shape index: {}]   ;;  %s3531_s16 = inlined_call_operand.vmem [shape: bf16[32,64], index: 16, kind: input, shape index: {}]   ;;  %s3532_s17 = inlined_call_operand.vmem [shape: f32[1,64], index: 17, kind: input, shape index: {}]   ;;  %s3533_s18 = inlined_call_operand.vmem [shape: bf16[64,32], index: 18, kind: input, shape index: {}]   ;;  %s3534_s19 = inlined_call_operand.vmem [shape: f32[1,32], index: 19, kind: input, shape index: {}]   ;;  %s3535_s20 = inlined_call_operand.hbm [shape: f32[2,8,32], index: 20, kind: output, shape index: {0}]   ;;  %s3536_s21 = inlined_call_operand.hbm [shape: f32[2,8,8], index: 21, kind: output, shape index: {1}]  }
   0x1   :  { %3553 = sst [smem:[#allocation29_spill]] %s3515_s0 }
   0x2   :  { %3554 = sst [smem:[#allocation30_spill]] %s3516_s1 }
   0x3   :  { %3555 = sst [smem:[#allocation31_spill]] %s3517_s2 }
   0x4   :  { %3556 = sst [smem:[#allocation32_spill]] %s3518_s3 }
   0x5   :  { %3557 = sst [smem:[#allocation33_spill]] %s3519_s4 }
   0x6   :  { %3558 = sst [smem:[#allocation34_spill]] %s3520_s5 }
   0x7   :  { %3559 = sst [smem:[#allocation35_spill]] %s3521_s6 }
   0x8   :  { %3560 = sst [smem:[#allocation36_spill]] %s3522_s7 }
   0x9   :  { %3561 = sst [smem:[#allocation37_spill]] %s3523_s8 }
   0xa   :  { %3562 = sst [smem:[#allocation38_spill]] %s3525_s10 }
   0xb   :  { %3563 = sst [smem:[#allocation39_spill]] %s3526_s11 }
   0xc   :  { %3564 = sst [smem:[#allocation40_spill]] %s3527_s12 }
   0xd   :  { %3565 = sst [smem:[#allocation41_spill]] %s3530_s15 }
   0xe   :  { %3566 = sst [smem:[#allocation42_spill]] %s3531_s16 }
   0xf   :  { %3567 = sst [smem:[#allocation43_spill]] %s3532_s17 }
  0x10   :  { %3568 = sst [smem:[#allocation44_spill]] %s3533_s18 }
  0x11   :  { %3569 = sst [smem:[#allocation45_spill]] %s3534_s19 }
  0x12   :  { %3570 = sst [smem:[#allocation46_spill]] %s3535_s20 }
  0x13   :  { %3571 = sst [smem:[#allocation47_spill]] %s3536_s21 }
  0x14   :  { %27 = vsyncpa [#allocation4], 0 }
  0x15   :  { %29 = vsyncpa [#allocation4 + $0x1], 0 }
  0x16   :  { %30 = vsyncpa [#allocation7], 0 }
  0x17   :  { %32 = vsyncpa [#allocation7 + $0x1], 0 }
  0x18   :  { %33 = vsyncpa [#allocation10], 0 }
  0x19   :  { %34 = vsyncpa [#allocation13], 0 }
  0x1a   :  { %35 = vsyncpa [#allocation16], 0 }
  0x1b   :  { %36 = vsyncpa [#allocation5], 0 }
  0x1c   :  { %38 = vsyncpa [#allocation5 + $0x1], 0 }
  0x1d   :  { %39 = vsyncpa [#allocation20], 0 }
  0x1e   :  { %41 = vsyncpa [#allocation20 + $0x1], 0  ;;  %s2890_s2 = smov 0   ;;  %s2892_s25 = smov 0  }
  0x1f   :  { %s2894_s26 = smov 0   ;;  %s2896_s27 = smov 0  }
  0x20 LB: > { %s2752_s3 = smov [#allocation8]   ;;  %s2911_s29 = sadd.s32 4294967295, %s2750_s27   ;;  %s2750_s27 = sphi %s2896_s27, %s3616_s27   ;;  %s2746_s26 = sphi %s2894_s26, %s3615_s26   ;;  %s2742_s25 = sphi %s2892_s25, %s3614_s25   ;;  %s2738_s2 = sphi %s2890_s2, %s3613_s2  }
  0x21   : > { %s552_s28 = sshll.u32 %s2752_s3, 4  ;;  %p2009_p0 = scmp.ge.s32.totalorder %s2750_s27, 1  ;;  %s2916_s28 = int_to_ptr.vmem [resolvable:$true] %s552_s28 }
  0x22   : > { %p3546_p1 = scmp.eq.s32.totalorder %s2911_s29, 0  ;;  %p539_p2 = scmp.lt.s32.totalorder %s2750_s27, 3 }
  0x23   : > { %s2753_s4 = smov [#allocation9]   ;;  %s2754_s5 = smov [#allocation12]  }
  0x24   : > { %p2918_p3 = pnand %p2009_p0, %p539_p2  ;;  %s563_s30 = sshll.u32 %s2753_s4, 4  ;;  %s2925_s30 = int_to_ptr.vmem [resolvable:$true] %s563_s30 }
  0x25   : > { %s588_s22 = sshll.u32 %s2754_s5, 4  ;;  %s2755_s1 = smov [#allocation15]   ;;  %s2933_s22 = int_to_ptr.vmem [resolvable:$true] %s588_s22 }
  0x26   : > { %s3572_s0 = scalar_select %p2918_p3, 1, 0 }
  0x27   : > { %p2232_p5 = pneg %p2918_p3  ;;  %s2935_s24 = sshll.u32 %s2755_s1, 4  ;;  %s614_s24 = int_to_ptr.vmem [resolvable:$true] %s2935_s24 }
  0x28   : > { %s3574_s21 = sld [smem:[#allocation32_spill]] }
  0x29   : > { %p2929_p6 = pnand %p2232_p5, %p3546_p1 }
  0x2b   : > { %p2945_p8 = pneg %p2929_p6 }
  0x2e   : > { %s2376_s19 = scalar_lea.hbm %s3574_s21, 128 }
  0x2f   : > { %p2377_p7 = scmp.ne.s32.totalorder %s3574_s21, %s2376_s19  ;;  %p2383_p11 = scmp.lt.u32.totalorder %s2376_s19, %s3574_s21 }
  0x31   : > { %p2379_p9 = pnand %p2945_p8, %p2377_p7 }
  0x33   : > { %p2380_p10 = pneg %p2379_p9 }
  0x35   : > { %p2385_p12 = pnand %p2383_p11, %p2380_p10 }
  0x37   : > { %2388 = shalt.err (!%p2385_p12)
}
  0x38   : > { %s2389_s17 = scalar_lea.vmem %s2916_s28, 128  ;;  %p2397_p5 = scmp.lt.s32.totalorder %s2916_s28, %s2916_s28 }
  0x39   : > { %p2390_p13 = scmp.ne.s32.totalorder %s2916_s28, %s2389_s17  ;;  %p2398_p4 = scmp.lt.s32.totalorder %s2389_s17, %s2389_s17 }
  0x3b   : > { %p2392_p0 = pnand %p2390_p13, %p2945_p8  ;;  %p2399_p7 = por %p2398_p4, %p2397_p5 }
  0x3d   : > { %p2393_p2 = pneg %p2392_p0 }
  0x3f   : > { %p2400_p9 = pnand %p2399_p7, %p2393_p2 }
  0x41   : > { %2403 = shalt.err (!%p2400_p9)
}
  0x42   : > { %2235 = dma.hbm_to_vmem [thread:$0]  (!%p2929_p6), %s3574_s21, 128, %s2916_s28, [#allocation7]  }
  0x43   : > { %s3576_s4 = sld [smem:[#allocation33_spill]] }
  0x49   : > { %s2404_s1 = scalar_lea.hbm %s3576_s4, 128 }
  0x4a   : > { %p2405_p10 = scmp.ne.s32.totalorder %s3576_s4, %s2404_s1  ;;  %p2411_p12 = scmp.lt.u32.totalorder %s2404_s1, %s3576_s4 }
  0x4c   : > { %p2407_p4 = pnand %p2405_p10, %p2945_p8 }
  0x4e   : > { %p2408_p11 = pneg %p2407_p4 }
  0x50   : > { %p2413_p13 = pnand %p2411_p12, %p2408_p11 }
  0x52   : > { %2416 = shalt.err (!%p2413_p13)
}
  0x53   : > { %s2417_s28 = scalar_lea.vmem %s2925_s30, 128  ;;  %p2425_p7 = scmp.lt.s32.totalorder %s2925_s30, %s2925_s30 }
  0x54   : > { %p2418_p0 = scmp.ne.s32.totalorder %s2925_s30, %s2417_s28  ;;  %p2426_p9 = scmp.lt.s32.totalorder %s2417_s28, %s2417_s28 }
  0x56   : > { %p2420_p2 = pnand %p2418_p0, %p2945_p8  ;;  %p2427_p10 = por %p2426_p9, %p2425_p7 }
  0x58   : > { %p2421_p5 = pneg %p2420_p2 }
  0x5a   : > { %p2428_p4 = pnand %p2427_p10, %p2421_p5 }
  0x5c   : > { %2431 = shalt.err (!%p2428_p4)
}
  0x5d   : > { %2238 = dma.hbm_to_vmem [thread:$0]  (!%p2929_p6), %s3576_s4, 128, %s2925_s30, [#allocation10]  }
  0x5e   : > { %s3577_s7 = sld [smem:[#allocation36_spill]] }
  0x64   : > { %s2432_s19 = scalar_lea.hbm %s3577_s7, 16 }
  0x65   : > { %p2433_p11 = scmp.ne.s32.totalorder %s3577_s7, %s2432_s19  ;;  %p2439_p0 = scmp.lt.u32.totalorder %s2432_s19, %s3577_s7 }
  0x67   : > { %p2435_p12 = pnand %p2433_p11, %p2945_p8 }
  0x69   : > { %p2436_p13 = pneg %p2435_p12 }
  0x6b   : > { %p2441_p2 = pnand %p2439_p0, %p2436_p13 }
  0x6d   : > { %2444 = shalt.err (!%p2441_p2)
}
  0x6e   : > { %s2445_s30 = scalar_lea.vmem %s2933_s22, 16  ;;  %s2452_s28 = scalar_lea.vmem %s2933_s22, 32 }
  0x6f   : > { %p2446_p5 = scmp.ne.s32.totalorder %s2933_s22, %s2445_s30  ;;  %p2453_p10 = scmp.lt.s32.totalorder %s2933_s22, %s2933_s22 }
  0x70   : > { %p2454_p4 = scmp.lt.s32.totalorder %s2452_s28, %s2445_s30 }
  0x71   : > { %p2448_p7 = pnand %p2446_p5, %p2945_p8 }
  0x72   : > { %p2455_p11 = por %p2454_p4, %p2453_p10 }
  0x73   : > { %p2449_p9 = pneg %p2448_p7 }
  0x75   : > { %p2456_p12 = pnand %p2455_p11, %p2449_p9 }
  0x77   : > { %2459 = shalt.err (!%p2456_p12)
}
  0x78   : > { %2244 = dma.hbm_to_vmem [thread:$0]  (!%p2929_p6), %s3577_s7, 16, %s2933_s22, [#allocation13]  }
  0x79   : > { %s2756_s16 = smov [#allocation11]   ;;  %s3578_s10 = sld [smem:[#allocation38_spill]] }
  0x7a   : > { %s577_s18 = sshll.u32 %s2756_s16, 4  ;;  %s578_s18 = int_to_ptr.vmem [resolvable:$true] %s577_s18 }
  0x7f   : > { %s2460_s3 = scalar_lea.hbm %s3578_s10, 16 }
  0x80   : > { %p2461_p13 = scmp.ne.s32.totalorder %s3578_s10, %s2460_s3  ;;  %p2467_p5 = scmp.lt.u32.totalorder %s2460_s3, %s3578_s10 }
  0x82   : > { %p2463_p0 = pnand %p2461_p13, %p2945_p8 }
  0x84   : > { %p2464_p2 = pneg %p2463_p0 }
  0x86   : > { %p2469_p7 = pnand %p2467_p5, %p2464_p2 }
  0x88   : > { %2472 = shalt.err (!%p2469_p7)
}
  0x89   : > { %s2473_s22 = scalar_lea.vmem %s614_s24, 16  ;;  %s2480_s11 = scalar_lea.vmem %s614_s24, 32 }
  0x8a   : > { %p2474_p9 = scmp.ne.s32.totalorder %s614_s24, %s2473_s22  ;;  %p2481_p11 = scmp.lt.s32.totalorder %s614_s24, %s614_s24 }
  0x8b   : > { %p2482_p12 = scmp.lt.s32.totalorder %s2480_s11, %s2473_s22 }
  0x8c   : > { %p2476_p10 = pnand %p2474_p9, %p2945_p8 }
  0x8d   : > { %p2483_p1 = por %p2482_p12, %p2481_p11 }
  0x8e   : > { %p2477_p4 = pneg %p2476_p10 }
  0x90   : > { %p2484_p3 = pnand %p2483_p1, %p2477_p4 }
  0x92   : > { %2487 = shalt.err (!%p2484_p3)
}
  0x93   : > { %2250 = dma.hbm_to_vmem [thread:$0]  (!%p2929_p6), %s3578_s10, 16, %s614_s24, [#allocation16]  }
  0x94   : > { %s3579_s6 = sld [smem:[#allocation35_spill]] }
  0x9a   : > { %s2488_s3 = scalar_lea.hbm %s3579_s6, 16 }
  0x9b   : > { %p2489_p13 = scmp.ne.s32.totalorder %s3579_s6, %s2488_s3  ;;  %p2495_p3 = scmp.lt.u32.totalorder %s2488_s3, %s3579_s6 }
  0x9d   : > { %p2491_p0 = pnand %p2489_p13, %p2945_p8 }
  0x9f   : > { %p2492_p1 = pneg %p2491_p0 }
  0xa1   : > { %p2497_p2 = pnand %p2495_p3, %p2492_p1 }
  0xa3   : > { %2500 = shalt.err (!%p2497_p2)
}
  0xa4   : > { %s2501_s22 = scalar_lea.vmem %s578_s18, 16  ;;  %s2508_s24 = scalar_lea.vmem %s578_s18, 32 }
  0xa5   : > { %p2502_p5 = scmp.ne.s32.totalorder %s578_s18, %s2501_s22  ;;  %p2509_p10 = scmp.lt.s32.totalorder %s578_s18, %s578_s18 }
  0xa6   : > { %p2510_p4 = scmp.lt.s32.totalorder %s2508_s24, %s2501_s22 }
  0xa7   : > { %p2504_p7 = pnand %p2502_p5, %p2945_p8 }
  0xa8   : > { %p2511_p11 = por %p2510_p4, %p2509_p10 }
  0xa9   : > { %p2505_p9 = pneg %p2504_p7 }
  0xab   : > { %p2512_p12 = pnand %p2511_p11, %p2505_p9 }
  0xad   : > { %2515 = shalt.err (!%p2512_p12)
}
  0xae   : > { %2241 = dma.hbm_to_vmem [thread:$0]  (!%p2929_p6), %s3579_s6, 16, %s578_s18, [#allocation10]  }
  0xaf   : > { %s2757_s16 = smov [#allocation14]   ;;  %s2758_s20 = smov [#allocation17]  }
  0xb0   : > { %s599_s19 = sshll.u32 %s2757_s16, 4  ;;  %s627_s3 = sshll.u32 %s2758_s20, 4  ;;  %s600_s19 = int_to_ptr.vmem [resolvable:$true] %s599_s19  ;;  %s628_s3 = int_to_ptr.vmem [resolvable:$true] %s627_s3 }
  0xb1   : > { %s3580_s8 = sld [smem:[#allocation37_spill]] }
  0xb7   : > { %s2516_s30 = scalar_lea.hbm %s3580_s8, 16 }
  0xb8   : > { %p2517_p13 = scmp.ne.s32.totalorder %s3580_s8, %s2516_s30  ;;  %p2523_p3 = scmp.lt.u32.totalorder %s2516_s30, %s3580_s8 }
  0xba   : > { %p2519_p0 = pnand %p2517_p13, %p2945_p8 }
  0xbc   : > { %p2520_p1 = pneg %p2519_p0 }
  0xbe   : > { %p2525_p2 = pnand %p2523_p3, %p2520_p1 }
  0xc0   : > { %2528 = shalt.err (!%p2525_p2)
}
  0xc1   : > { %s2529_s18 = scalar_lea.vmem %s600_s19, 16  ;;  %s2536_s15 = scalar_lea.vmem %s600_s19, 32 }
  0xc2   : > { %p2530_p5 = scmp.ne.s32.totalorder %s600_s19, %s2529_s18  ;;  %p2537_p10 = scmp.lt.s32.totalorder %s600_s19, %s600_s19 }
  0xc3   : > { %p2538_p4 = scmp.lt.s32.totalorder %s2536_s15, %s2529_s18 }
  0xc4   : > { %p2532_p7 = pnand %p2530_p5, %p2945_p8 }
  0xc5   : > { %p2539_p11 = por %p2538_p4, %p2537_p10 }
  0xc6   : > { %p2533_p9 = pneg %p2532_p7 }
  0xc8   : > { %p2540_p12 = pnand %p2539_p11, %p2533_p9 }
  0xca   : > { %2543 = shalt.err (!%p2540_p12)
}
  0xcb   : > { %2247 = dma.hbm_to_vmem [thread:$0]  (!%p2929_p6), %s3580_s8, 16, %s600_s19, [#allocation13]  }
  0xcc   : > { %s3581_s12 = sld [smem:[#allocation40_spill]] }
  0xd2   : > { %s2544_s30 = scalar_lea.hbm %s3581_s12, 16 }
  0xd3   : > { %p2545_p13 = scmp.ne.s32.totalorder %s3581_s12, %s2544_s30  ;;  %p2551_p3 = scmp.lt.u32.totalorder %s2544_s30, %s3581_s12 }
  0xd5   : > { %p2547_p0 = pnand %p2545_p13, %p2945_p8 }
  0xd7   : > { %p2548_p1 = pneg %p2547_p0 }
  0xd9   : > { %p2553_p2 = pnand %p2551_p3, %p2548_p1 }
  0xdb   : > { %2556 = shalt.err (!%p2553_p2)
}
  0xdc   : > { %s2557_s18 = scalar_lea.vmem %s628_s3, 16  ;;  %s2564_s19 = scalar_lea.vmem %s628_s3, 32 }
  0xdd   : > { %p2558_p5 = scmp.ne.s32.totalorder %s628_s3, %s2557_s18  ;;  %p2565_p10 = scmp.lt.s32.totalorder %s628_s3, %s628_s3 }
  0xde   : > { %p2566_p4 = scmp.lt.s32.totalorder %s2564_s19, %s2557_s18 }
  0xdf   : > { %p2560_p7 = pnand %p2558_p5, %p2945_p8 }
  0xe0   : > { %p2567_p11 = por %p2566_p4, %p2565_p10 }
  0xe1   : > { %p2561_p9 = pneg %p2560_p7 }
  0xe3   : > { %p2568_p12 = pnand %p2567_p11, %p2561_p9 }
  0xe5   : > { %2571 = shalt.err (!%p2568_p12)
}
  0xe6   : > { %2253 = dma.hbm_to_vmem [thread:$0]  (!%p2929_p6), %s3581_s12, 16, %s628_s3, [#allocation16]  }
  0xe7   : > { %s2008_s5 = sadd.s32 4294967294, %s2750_s27   ;;  %s3088_s23 = sadd.s32 1, %s2750_s27  }
  0xe8   : > { %s80_s20 = sadd.s32 1, %s2746_s26  ;;  %s77_s1 = ssub.s32 %s2750_s27, %s3088_s23 }
  0xe9   : > { %p87_p8 = scmp.ne.s32.totalorder %s2746_s26, %s2742_s25  ;;  %p78_p13 = scmp.eq.s32.totalorder %s77_s1, 0 }
  0xea   : > { %p88_p0 = scmp.eq.s32.totalorder %s2750_s27, 0  ;;  %p93_p1 = scmp.ne.s32.totalorder %s2742_s25, %s2738_s2 }
  0xeb   : > { %p500_p3 = scmp.eq.s32.totalorder %s2911_s29, 1  ;;  %p3582_p5 = scmp.eq.s32.totalorder %s2911_s29, 0 }
  0xec   : > { %s3100_s17 = scalar_select %p78_p13, %s2746_s26, %s80_s20  }
  0xed   : > { %p89_p2 = por %p88_p0, %p87_p8  ;;  %p3104_p7 = por %p3582_p5, %p93_p1 }
  0xee   : > { %p3108_p6 = por %p500_p3, %p87_p8  ;;  %p506_p9 = scmp.eq.s32.totalorder %s2008_s5, 1 }
  0xef   : > { %s3583_s3 = scalar_select %p3104_p7, 1, 0 }
  0xf0   : > { %s3584_s30 = scalar_select %p3108_p6, 1, 0 }
  0xf1   : > { %p2275_p10 = scmp.lt.s32.totalorder %s2750_s27, 2  ;;  %s3114_s28 = sand.u32 1, %s2746_s26  }
  0xf2   : > { %p3116_p4 = por %p506_p9, %p93_p1  ;;  %s2018_s24 = sshll.u32 %s2750_s27, 4 }
  0xf3   : > { %s3586_s19 = sld [smem:[#allocation30_spill]]  ;;  %s669_s16 = scalar_lea.vmem [#allocation3], %s3114_s28 }
  0xf4   : > { %s3585_s22 = scalar_select %p3116_p4, 1, 0 }
  0xf5   : > { %s676_s5 = sshll.u32 %s669_s16, 4  ;;  %p3129_p11 = pnand %p2275_p10, %p89_p2  ;;  %s3127_s5 = int_to_ptr.vmem [resolvable:$true] %s676_s5 }
  0xf6   : > { %s3588_s11 = sld [smem:[#allocation31_spill]]  ;;  %s667_s7 = scalar_lea.sflag [#allocation4], %s3114_s28 }
  0xf7   : > { %p2574_p8 = pneg %p3129_p11 }
  0xf9   : > { %s3124_s15 = scalar_lea.hbm %s3586_s19, %s2018_s24  ;;  %s2577_s12 = scalar_lea.hbm %s3586_s19, 32 }
  0xfa   : > { %s2572_s8 = scalar_lea.hbm %s3124_s15, 16  ;;  %p2578_p1 = scmp.lt.u32.totalorder %s3124_s15, %s3586_s19 }
  0xfb   : > { %p2573_p12 = scmp.ne.s32.totalorder %s3124_s15, %s2572_s8  ;;  %p2579_p3 = scmp.lt.u32.totalorder %s2577_s12, %s2572_s8 }
  0xfc   : > { %s3137_s18 = scalar_lea.hbm %s3588_s11, %s2018_s24  ;;  %p2581_p5 = scmp.lt.u32.totalorder %s2572_s8, %s3124_s15 }
  0xfd   : > { %p2575_p13 = pnand %p2574_p8, %p2573_p12  ;;  %p2580_p2 = por %p2579_p3, %p2578_p1 }
  0xff   : > { %p2576_p0 = pneg %p2575_p13  ;;  %p2582_p9 = por %p2581_p5, %p2580_p2 }
 0x101   : > { %p2583_p10 = pnand %p2582_p9, %p2576_p0 }
 0x103   : > { %2586 = shalt.err (!%p2583_p10)
}
 0x104   : > { %s2587_s6 = scalar_lea.vmem %s3127_s5, 16  ;;  %s2759_s10 = smov [#allocation3]  }
 0x105   : > { %p2588_p12 = scmp.ne.s32.totalorder %s3127_s5, %s2587_s6  ;;  %s2592_s4 = sshll.u32 %s2759_s10, 4  ;;  %s2593_s4 = int_to_ptr.vmem [resolvable:$false] %s2592_s4 }
 0x106   : > { %s2594_s21 = scalar_lea.vmem %s2593_s4, 32  ;;  %p2595_p6 = scmp.lt.s32.totalorder %s3127_s5, %s2593_s4 }
 0x107   : > { %p2590_p13 = pnand %p2588_p12, %p2574_p8  ;;  %p2596_p1 = scmp.lt.s32.totalorder %s2594_s21, %s2587_s6 }
 0x109   : > { %p2591_p4 = pneg %p2590_p13  ;;  %p2597_p3 = por %p2596_p1, %p2595_p6 }
 0x10b   : > { %p2598_p2 = pnand %p2597_p3, %p2591_p4 }
 0x10d   : > { %2601 = shalt.err (!%p2598_p2)
}
 0x10e   : > { %2257 = dma.hbm_to_vmem [thread:$0]  (!%p3129_p11), %s3124_s15, 16, %s3127_s5, %s667_s7  }
 0x10f   : > { %s686_s8 = scalar_lea.vmem [#allocation6], %s3114_s28  ;;  %s3589_s24 = sand.u32 1, %s2750_s27  }
 0x110   : > { %s693_s12 = sshll.u32 %s686_s8, 4  ;;  %s684_s1 = scalar_lea.sflag [#allocation7], %s3589_s24  ;;  %s694_s12 = int_to_ptr.vmem [resolvable:$true] %s693_s12 }
 0x111   : > { %s2602_s16 = scalar_lea.hbm %s3137_s18, 16  ;;  %s2607_s4 = scalar_lea.hbm %s3588_s11, 32 }
 0x112   : > { %p2603_p6 = scmp.ne.s32.totalorder %s3137_s18, %s2602_s16  ;;  %p2608_p5 = scmp.lt.u32.totalorder %s3137_s18, %s3588_s11 }
 0x113   : > { %p2609_p9 = scmp.lt.u32.totalorder %s2607_s4, %s2602_s16  ;;  %p2611_p12 = scmp.lt.u32.totalorder %s2602_s16, %s3137_s18 }
 0x114   : > { %p2605_p4 = pnand %p2603_p6, %p2574_p8 }
 0x115   : > { %p2610_p10 = por %p2609_p9, %p2608_p5 }
 0x116   : > { %p2606_p0 = pneg %p2605_p4 }
 0x117   : > { %p2612_p13 = por %p2611_p12, %p2610_p10 }
 0x119   : > { %p2613_p1 = pnand %p2612_p13, %p2606_p0 }
 0x11b   : > { %2616 = shalt.err (!%p2613_p1)
}
 0x11c   : > { %s2617_s7 = scalar_lea.vmem %s694_s12, 16  ;;  %s2760_s28 = smov [#allocation6]  }
 0x11d   : > { %p2618_p3 = scmp.ne.s32.totalorder %s694_s12, %s2617_s7  ;;  %s2622_s15 = sshll.u32 %s2760_s28, 4  ;;  %s2623_s15 = int_to_ptr.vmem [resolvable:$false] %s2622_s15 }
 0x11e   : > { %s2624_s5 = scalar_lea.vmem %s2623_s15, 32  ;;  %p2625_p4 = scmp.lt.s32.totalorder %s694_s12, %s2623_s15 }
 0x11f   : > { %p2620_p2 = pnand %p2618_p3, %p2574_p8  ;;  %p2626_p7 = scmp.lt.s32.totalorder %s2624_s5, %s2617_s7 }
 0x121   : > { %p2621_p6 = pneg %p2620_p2  ;;  %p2627_p5 = por %p2626_p7, %p2625_p4 }
 0x123   : > { %p2628_p9 = pnand %p2627_p5, %p2621_p6 }
 0x125   : > { %2631 = shalt.err (!%p2628_p9)
}
 0x126   : > { %2260 = dma.hbm_to_vmem [thread:$0]  (!%p3129_p11), %s3137_s18, 16, %s694_s12, %s684_s1  }
 0x127   : > { %p3590_p0 = scmp.ne.s32.totalorder %s3572_s0, 0 }
 0x128   : > { %s3190_s19 = sand.u32 (!%p3590_p0), 1, %s2742_s25   ;;  %p3591_p8 = scmp.ne.s32.totalorder (!%p3590_p0), %s3583_s3, 0 }
 0x129   : > { %702 = sbr.rel (%p3590_p0) target bundleno = 3647 (0xe3f), region = 100  ;;  %s705_s8 = scalar_lea.sflag (!%p3590_p0), [#allocation4], %s3190_s19 }
 0x12a   : > { %s707_s24 = scalar_lea.vmem (!%p3590_p0), [#allocation3], %s3190_s19 }
 0x130   : > { %2705 = dma.done.wait (%p3591_p8), %s705_s8, 16  }
 0x131   : > { %2707 = vsyncadd (%p3591_p8), %s705_s8, 4294967280  ;;  %s712_s20 = sand.u32 1, %s2911_s29   ;;  %s715_s0 = scalar_lea.vmem [#allocation6], %s3190_s19 }
 0x132   : > { %s713_s18 = scalar_lea.sflag [#allocation7], %s712_s20 }
 0x133   : > { %2709 = dma.done.wait (%p3591_p8), %s713_s18, 16  }
 0x134   : > { %2711 = vsyncadd (%p3591_p8), %s713_s18, 4294967280  ;;  %p3592_p7 = scmp.eq.s32.totalorder %s2911_s29, 0 }
 0x136   : > { %2713 = dma.done.wait (%p3592_p7), [#allocation7], 128   ;;  %p3593_p11 = pmov %p3592_p7 }
 0x137   : > { %p3594_p10 = pmov %p3592_p7 }
 0x138   : > { %2715 = vsyncadd (%p3593_p11), [#allocation7], 4294967168 }
 0x139   : > { %2717 = dma.done.wait (%p3594_p10), [#allocation10], 144   ;;  %p3595_p12 = pmov %p3592_p7 }
 0x13a   : > { %p3596_p13 = pmov %p3592_p7 }
 0x13b   : > { %2719 = vsyncadd (%p3595_p12), [#allocation10], 4294967152 }
 0x13c   : > { %2721 = dma.done.wait (%p3596_p13), [#allocation13], 32   ;;  %p3597_p1 = pmov %p3592_p7 }
 0x13e   : > { %2723 = vsyncadd (%p3597_p1), [#allocation13], 4294967264  ;;  %p3598_p3 = pmov %p3597_p1 }
 0x13f   : > { %p3599_p2 = pmov %p3597_p1 }
 0x140   : > { %2725 = dma.done.wait (%p3598_p3), [#allocation16], 32  }
 0x141   : > { %2727 = vsyncadd (%p3599_p2), [#allocation16], 4294967264  ;;  %p814_p6 = scmp.lt.s32.totalorder %s2911_s29, 1  ;;  %s3600_s6 = sld [smem:[#allocation29_spill]]  ;;  %vm825_vm0 = vcmask 261120   ;;  %v2340_v7 = vld [vmem:[%s3524_s9] sm:$0xff]   ;;  %v992_v25 = vlaneseq }
 0x142   : > { %v2761_v8 = vmov 0.0   ;;  %vm2762_vm1 = vmmov 0   ;;  %v2341_v9 = vld [vmem:[%s3524_s9 + $0x8] sm:$0xff]   ;;  %v986_v10 = vld [vmem:[#allocation9] sm:$0xff]  ;;  %s2763_s15 = smov 32   ;;  %s3601_s20 = sld [smem:[#allocation34_spill]] }
 0x143   : > { %s815_s3 = scalar_select %p814_p6, %s2911_s29, 1  ;;  %2104 = vmatprep.subr.bf16.mxu1 %v2761_v8  ;;  %2108 = vmatprep.mubr.msk.bf16.mxu1 %vm2762_vm1, %v2761_v8  ;;  %v3251_v17 = vld [vmem:[#allocation11] ss:$0 sm:$0xff]  ;;  %v2342_v20 = vld [vmem:[%s3528_s13] sm:$0xff]   ;;  %v2343_v22 = vld [vmem:[%s3528_s13 + $0x8] sm:$0xff]   ;;  %v3271_v30 = vshrl.u32 %v992_v25, 7 }
 0x144   : > { %2105 = vmatpush3.bf16.msra.mxu1 %v2340_v7  ;;  %2120 = vmatprep.subr.bf16.mxu0 %v2761_v8  ;;  %v921_v23 = vld [vmem:[%s707_s24] sm:$0x1]  ;;  %v2033_v39 = vld [vmem:[#allocation15] ss:$0 sm:$0xff]  ;;  %v983_v41 = vld [vmem:[#allocation8] sm:$0xff]  ;;  %s2766_s4 = smov 120  }
 0x145   : > { %s2030_s12 = sshll.u32 %s815_s3, 3  ;;  %2106 = vmatprep.subr.bf16.mxu1 %v2761_v8  ;;  %2122 = vmatprep.mubr.msk.bf16.mxu0 %vm2762_vm1, %v2761_v8  ;;  %v922_v24 = vpack.c.bf16 %v921_v23, %v921_v23  ;;  %v927_v31 = vld [vmem:[%s3529_s14] sm:$0x1]  ;;  %v994_v32 = vsub.s32 0, %v3271_v30  ;;  %s2767_s21 = smov 80   ;;  %vm1007_vm2 = vcmask 64512  }
 0x146   : > { %988 = vrot.lane.b32.xlu1 %v986_v10, %s2763_s15  ;;  %s2768_s7 = smov 112   ;;  %s2769_s28 = smov 72   ;;  %v1004_v61 = vld [vmem:[%s715_s0] sm:$0x1]  ;;  %vm1085_vm4 = vcmask 1043456   ;;  %vm1248_vm5 = vcmask 130112  }
 0x147   : > { %s817_s10 = scalar_lea.vmem %s3600_s6, %s2030_s12  ;;  %s2764_s6 = smov 88   ;;  %vm1005_vm3 = vcmp.gt.f32.partialorder %v1004_v61, 0.5  ;;  %vm1367_vm6 = vcmask 195712   ;;  %vm1486_vm7 = vcmask 261312   ;;  %vm1717_vm8 = vcmask 523264  }
 0x148   : > { %v3225_v0 = vld [vmem:[%s817_s10] sm:$0xff]  ;;  %2107 = vmatpush3.bf16.msra.mxu1 %v2341_v9  ;;  %s2765_s10 = smov 96   ;;  %v1006_v62 = vsel %vm1005_vm3, -1e+30, %v2761_v8  ;;  %s2771_s0 = smov 64  }
 0x149   : > { %v826_v1 = vsel %vm825_vm0, %v3225_v0, 0.0  ;;  %2112 = vmatprep.subr.bf16.mxu1 %v2761_v8  ;;  %v3249_v15 = vld [vmem:[%s3601_s20] ss:$0 sm:$0xff]  ;;  %v1013_v63 = vrot.slane %v1006_v62, %v994_v32  ;;  %s2028_s5 = sshll.u32 %s3190_s19, 3  ;;  %s2772_s20 = smov 56  }
 0x14a   : > { %827 = vadd.xlane.f32.xlu0 %v826_v1  ;;  %s3320_s8 = scalar_lea.vmem [#allocation19], %s2028_s5  ;;  %s2773_s18 = smov 48  }
 0x14b   : > { %1008 = vst.msk [vmem:[%s3320_s8] sm:$0xff] %vm1007_vm2, %v2761_v8  ;;  %s2774_s3 = smov 40   ;;  %s2775_s12 = smov 8  }
 0x14c   : > { %s3602_s24 = sld [smem:[#allocation39_spill]]  ;;  %s3607_s16 = sld [smem:[#allocation45_spill]] }
 0x14d   : > { %p3609_p5 = scmp.ne.s32.totalorder %s3584_s30, 0 }
 0x1b8   : > { %v989_v42 = vpop.permute.xlu1 %988 }
 0x1d7   : > { %v828_v2 = vpop.xlane.xlu0 %827 }
 0x1d8   : > { %v830_v3 = vmul.f32 0.03125, %v828_v2 }
 0x1da   : > { %v831_v4 = vsub.f32 %v3225_v0, %v830_v3 }
 0x1dc   : > { %v832_v5 = vmul.f32 %v831_v4, %v831_v4 }
 0x1de   : > { %v833_v6 = vsel %vm825_vm0, %v832_v5, 0.0 }
 0x1df   : > { %834 = vadd.xlane.f32.xlu0 %v833_v6 }
 0x26c   : > { %v835_v11 = vpop.xlane.xlu0 %834 }
 0x26d   : > { %v836_v12 = vmul.f32 0.03125, %v835_v11 }
 0x26f   : > { %v837_v13 = vadd.f32 1e-05, %v836_v12 }
 0x271   : > { %2352 = vrsqrt.f32 %v837_v13 }
 0x27b   : > { %v2353_v14 = vpop.eup %2352 }
 0x27c   : > { %v839_v16 = vmul.f32 %v2353_v14, %v831_v4 }
 0x27e   : > { %v846_v18 = vmul.f32 %v3249_v15, %v839_v16 }
 0x280   : > { %v853_v19 = vadd.f32 %v3251_v17, %v846_v18 }
 0x282   : > { %v854_v21 = vpack.c.bf16 %v853_v19, %v853_v19 }
 0x284   : > { %2109 = vmatmul.mubr.msk.bf16.vlgmr.msra.gmra.mrb[0].mxu1 %vm825_vm0, %v854_v21 }
 0x285   : > { %2113 = vmatpush3.bf16.msra.mxu1 %v2342_v20  ;;  %2116 = vmatprep.mubr.msk.bf16.mxu1 %vm2762_vm1, %v2761_v8 }
 0x286   : > { %2114 = vmatprep.subr.bf16.mxu1 %v2761_v8 }
 0x289   : > { %2115 = vmatpush3.bf16.msra.mxu1 %v2343_v22 }
 0x28a   : > { %2126 = vmatprep.subr.bf16.mxu1 %v2761_v8 }
 0x28c   : > { %2117 = vmatmul.mubr.msk.bf16.vlgmr.msra.gmra.mrb[4].mxu1 %vm825_vm0, %v922_v24 }
 0x28d   : > { %2128 = vmatprep.mubr.msk.bf16.mxu1 %vm2762_vm1, %v2761_v8 }
 0x357   : > { %v915_v26 = vpop.f32.mrb[0].mxu1 }
 0x358   : > { %v2110_v27 = vpop.f32.mrb[1].mxu1  ;;  %v3280_v40 = vadd.f32 %v2033_v39, %v915_v26 }
 0x359   : > { %v918_v28 = vpop.f32.mrb[2].mxu1 }
 0x35a   : > { %v2111_v29 = vpop.f32.mrb[3].mxu1  ;;  %v984_v43 = vadd.f32 %v983_v41, %v3280_v40  ;;  %v991_v44 = vadd.f32 %v989_v42, %v3280_v40 }
 0x35c   : > { %v985_v47 = vmul.f32 0.35355338, %v984_v43  ;;  %v1003_v43 = vpack.c.bf16 %v3280_v40, %v3280_v40 }
 0x35e   : > { %v1001_v49 = vpack.c.bf16 %v985_v47, %v985_v47 }
 0x35f   : > { %v977_v33 = vpop.f32.mrb[4].mxu1 }
 0x360   : > { %v978_v34 = vadd.f32 %v977_v33, %v927_v31  ;;  %v2118_v35 = vpop.f32.mrb[5].mxu1 }
 0x361   : > { %v980_v36 = vpop.f32.mrb[6].mxu1 }
 0x362   : > { %v995_v37 = vrot.slane %v978_v34, %v994_v32  ;;  %v2119_v38 = vpop.f32.mrb[7].mxu1 }
 0x364   : > { %997 = vrot.lane.b32.xlu1 %v995_v37, %s2763_s15  ;;  %s2770_s15 = smov 104  }
 0x3d6   : > { %v998_v45 = vpop.permute.xlu1 %997 }
 0x3d7   : > { %v1000_v46 = vadd.f32 %v998_v45, %v991_v44 }
 0x3d9   : > { %v1002_v48 = vpack.c.bf16 %v1000_v46, %v1000_v46 }
 0x3db   : > { %1133 = vrot.lane.b32.xlu1 %v1002_v48, %s2764_s6  ;;  %1016 = vrot.lane.b32.xlu0 %v1002_v48, %s2765_s10  ;;  %s3605_s6 = sld [smem:[#allocation44_spill]]  ;;  %s2067_s10 = sshll.u32 %s2911_s29, 7 }
 0x3df   : > { %1131 = vrot.lane.b32.xlu1 %v1001_v49, %s2766_s4  ;;  %s2776_s4 = smov 16  }
 0x3e3   : > { %1252 = vrot.lane.b32.xlu1 %v1002_v48, %s2767_s21  ;;  %s2777_s21 = smov 24  }
 0x3e7   : > { %1250 = vrot.lane.b32.xlu1 %v1001_v49, %s2768_s7  ;;  %s3608_s7 = sld [smem:[#allocation47_spill]] }
 0x3eb   : > { %1371 = vrot.lane.b32.xlu1 %v1002_v48, %s2769_s28 }
 0x3ed   : > { %s3438_s28 = scalar_lea.hbm %s3608_s7, %s2067_s10 }
 0x3ef   : > { %1369 = vrot.lane.b32.xlu1 %v1001_v49, %s2770_s15  ;;  %s3603_s15 = sld [smem:[#allocation41_spill]] }
 0x44d   : > { %v1134_v50 = vpop.permute.xlu1 %1133  ;;  %v1017_v51 = vpop.permute.xlu0 %1016 }
 0x44e   : > { %v1022_v52 = vsel %vm1007_vm2, %v1017_v51, 0  ;;  %v1139_v54 = vsel %vm1007_vm2, %v1134_v50, 0 }
 0x44f   : > { %2121 = vmatpush3.bf16.xpose.msra.mxu0 %v1022_v52 }
 0x450   : > { %2132 = vmatprep.subr.bf16.mxu0 %v2761_v8 }
 0x451   : > { %v1132_v53 = vpop.permute.xlu1 %1131 }
 0x455   : > { %v1253_v55 = vpop.permute.xlu1 %1252 }
 0x456   : > { %2123 = vmatmul.mubr.msk.bf16.vlgmr.msra.gmra.mrb[0].mxu0 %vm1007_vm2, %v1001_v49  ;;  %v1258_v57 = vsel %vm1007_vm2, %v1253_v55, 0 }
 0x457   : > { %2133 = vmatpush3.bf16.xpose.msra.mxu0 %v1139_v54  ;;  %2134 = vmatprep.mubr.msk.bf16.mxu0 %vm2762_vm1, %v2761_v8  ;;  %v1075_v54 = vld [vmem:[%s3320_s8] sm:$0xff] }
 0x458   : > { %2144 = vmatprep.subr.bf16.mxu0 %v2761_v8 }
 0x459   : > { %v1251_v56 = vpop.permute.xlu1 %1250 }
 0x45d   : > { %v1372_v58 = vpop.permute.xlu1 %1371 }
 0x45e   : > { %2135 = vmatmul.mubr.msk.bf16.vlgmr.msra.gmra.mrb[4].mxu0 %vm1007_vm2, %v1132_v53  ;;  %v1377_v59 = vsel %vm1007_vm2, %v1372_v58, 0 }
 0x45f   : > { %2145 = vmatpush3.bf16.xpose.msra.mxu0 %v1258_v57  ;;  %2146 = vmatprep.mubr.msk.bf16.mxu0 %vm2762_vm1, %v2761_v8 }
 0x460   : > { %2156 = vmatprep.subr.bf16.mxu0 %v2761_v8 }
 0x461   : > { %v1370_v60 = vpop.permute.xlu1 %1369 }
 0x466   : > { %2147 = vmatmul.mubr.msk.bf16.vlgmr.msra.gmra.mrb[8].mxu0 %vm1007_vm2, %v1251_v56 }
 0x467   : > { %2157 = vmatpush3.bf16.xpose.msra.mxu0 %v1377_v59  ;;  %2158 = vmatprep.mubr.msk.bf16.mxu0 %vm2762_vm1, %v2761_v8 }
 0x468   : > { %2168 = vmatprep.subr.bf16.mxu0 %v2761_v8 }
 0x46e   : > { %2159 = vmatmul.mubr.msk.bf16.vlgmr.msra.gmra.mrb[12].mxu0 %vm1007_vm2, %v1370_v60 }
 0x46f   : > { %2172 = vmatprep.mubr.msk.bf16.mxu0 %vm2762_vm1, %v2761_v8 }
 0x529   : > { %v1058_v1 = vpop.f32.mrb[0].mxu0 }
 0x52a   : > { %v1059_v2 = vadd.f32 %v1058_v1, %v1013_v63  ;;  %v2124_v3 = vpop.f32.mrb[1].mxu0 }
 0x52b   : > { %v1061_v4 = vpop.f32.mrb[2].mxu0 }
 0x52c   : > { %v2125_v5 = vpop.f32.mrb[3].mxu0  ;;  %v1064_v6 = vsel %vm1007_vm2, %v1059_v2, -inf }
 0x52d   : > { %1065 = vmax.xlane.f32.xlu0 %v1064_v6 }
 0x531   : > { %v1175_v7 = vpop.f32.mrb[4].mxu0 }
 0x532   : > { %v1176_v9 = vadd.f32 %v1175_v7, %v1013_v63  ;;  %v2136_v10 = vpop.f32.mrb[5].mxu0 }
 0x533   : > { %v1178_v11 = vpop.f32.mrb[6].mxu0 }
 0x534   : > { %v2137_v12 = vpop.f32.mrb[7].mxu0  ;;  %v1181_v13 = vsel %vm1007_vm2, %v1176_v9, -inf }
 0x535   : > { %1182 = vmax.xlane.f32.xlu1 %v1181_v13 }
 0x539   : > { %v1294_v14 = vpop.f32.mrb[8].mxu0 }
 0x53a   : > { %v1295_v16 = vadd.f32 %v1294_v14, %v1013_v63  ;;  %v2148_v18 = vpop.f32.mrb[9].mxu0 }
 0x53b   : > { %v1297_v19 = vpop.f32.mrb[10].mxu0 }
 0x53c   : > { %v2149_v20 = vpop.f32.mrb[11].mxu0  ;;  %v1300_v21 = vsel %vm1007_vm2, %v1295_v16, -inf }
 0x53d   : > { %1301 = vmax.xlane.f32.xlu0 %v1300_v21 }
 0x541   : > { %v1413_v22 = vpop.f32.mrb[12].mxu0 }
 0x542   : > { %v1414_v23 = vadd.f32 %v1413_v22, %v1013_v63  ;;  %v2160_v24 = vpop.f32.mrb[13].mxu0 }
 0x543   : > { %v1416_v25 = vpop.f32.mrb[14].mxu0 }
 0x544   : > { %v2161_v26 = vpop.f32.mrb[15].mxu0  ;;  %v1419_v27 = vsel %vm1007_vm2, %v1414_v23, -inf }
 0x545   : > { %1420 = vmax.xlane.f32.xlu0 %v1419_v27 }
 0x5ba   : > { %v1066_v28 = vpop.xlane.xlu0 %1065 }
 0x5bb   : > { %v1067_v29 = vsub.f32 %v1059_v2, %v1066_v28 }
 0x5bd   : > { %v1068_v30 = vmul.f32 1.442695, %v1067_v29 }
 0x5bf   : > { %2354 = vpow2.f32 %v1068_v30 }
 0x5c2   : > { %v1183_v31 = vpop.xlane.xlu1 %1182 }
 0x5c3   : > { %v1184_v32 = vsub.f32 %v1176_v9, %v1183_v31  ;;  %v2344_v31 = vld [vmem:[%s3602_s24] sm:$0xff]  }
 0x5c4   : > { %2169 = vmatpush3.bf16.msra.mxu0 %v2344_v31 }
 0x5c5   : > { %v1185_v33 = vmul.f32 1.442695, %v1184_v32  ;;  %v2345_v32 = vld [vmem:[%s3602_s24 + $0x8] sm:$0xff]   ;;  %2170 = vmatprep.subr.bf16.mxu0 %v2761_v8 }
 0x5c7   : > { %2356 = vpow2.f32 %v1185_v33 }
 0x5c8   : > { %2171 = vmatpush3.bf16.msra.mxu0 %v2345_v32 }
 0x5c9   : > { %v2355_v34 = vpop.eup %2354  ;;  %2184 = vmatprep.subr.bf16.mxu0 %v2761_v8 }
 0x5ca   : > { %v1070_v35 = vsel %vm1007_vm2, %v2355_v34, 0.0  ;;  %v1302_v36 = vpop.xlane.xlu0 %1301 }
 0x5cb   : > { %1071 = vadd.xlane.f32.xlu1 %v1070_v35  ;;  %v1303_v46 = vsub.f32 %v1295_v16, %v1302_v36 }
 0x5cd   : > { %v1304_v47 = vmul.f32 1.442695, %v1303_v46 }
 0x5d1   : > { %v2357_v37 = vpop.eup %2356 }
 0x5d2   : > { %v1421_v38 = vpop.xlane.xlu0 %1420  ;;  %v1187_v39 = vsel %vm1007_vm2, %v2357_v37, 0.0 }
 0x5d3   : > { %v1422_v41 = vsub.f32 %v1414_v23, %v1421_v38  ;;  %1188 = vadd.xlane.f32.xlu0 %v1187_v39 }
 0x5d5   : > { %v1423_v42 = vmul.f32 1.442695, %v1422_v41 }
 0x5d7   : > { %2358 = vpow2.f32 %v1423_v42 }
 0x5d8   : > { %2360 = vpow2.f32 %v1304_v47  ;;  %v2048_v47 = vld [vmem:[#allocation17] ss:$0 sm:$0xff] }
 0x5dc   : > { %1080 = vrot.lane.b32.xlu1 %v1003_v43, %s2771_s0  ;;  %s1785_s0 = scalar_lea.sflag [#allocation20], %s3190_s19 }
 0x5e1   : > { %v3325_v44 = vpop.eup %2358 }
 0x5e2   : > { %v1425_v45 = vsel %vm1007_vm2, %v3325_v44, 0.0  ;;  %v2361_v40 = vpop.eup %2360 }
 0x5e3   : > { %1426 = vadd.xlane.f32.xlu0 %v1425_v45  ;;  %v1306_v48 = vsel %vm1007_vm2, %v2361_v40, 0.0 }
 0x5f9   : > { %1196 = vrot.lane.b32.xlu0 %v1003_v43, %s2772_s20 }
 0x600   : > { %1307 = vadd.xlane.f32.xlu1 %v1306_v48 }
 0x611   : > { %1315 = vrot.lane.b32.xlu1 %v1003_v43, %s2773_s18  ;;  %s3604_s18 = sld [smem:[#allocation42_spill]] }
 0x615   : > { %1434 = vrot.lane.b32.xlu1 %v1003_v43, %s2774_s3  ;;  %s3606_s3 = sld [smem:[#allocation43_spill]] }
 0x658   : > { %v1072_v49 = vpop.xlane.xlu1 %1071 }
 0x659   : > { %2362 = vrcp.f32 %v1072_v49 }
 0x65c   : > { %v1081_v50 = vpop.permute.xlu1 %1080 }
 0x65d   : > { %v1087_v51 = vsel %vm1085_vm4, %v1081_v50, 0 }
 0x65e   : > { %2127 = vmatpush3.bf16.msra.mxu1 %v1087_v51 }
 0x65f   : > { %2138 = vmatprep.subr.bf16.mxu1 %v2761_v8 }
 0x660   : > { %v1189_v52 = vpop.xlane.xlu0 %1188 }
 0x661   : > { %2364 = vrcp.f32 %v1189_v52 }
 0x663   : > { %v2363_v53 = vpop.eup %2362 }
 0x664   : > { %v1074_v55 = vmul.f32 %v2363_v53, %v2355_v34 }
 0x666   : > { %v1078_v56 = vpack.c.bf16 %v1074_v55, %v1074_v55  ;;  %v1076_v57 = vadd.f32 %v1075_v54, %v1074_v55 }
 0x668   : > { %2129 = vmatmul.mubr.msk.bf16.vlgmr.msra.gmra.mrb[8].mxu1 %vm1007_vm2, %v1078_v56  ;;  %1077 = vst.msk [vmem:[%s3320_s8] sm:$0xff] %vm1007_vm2, %v1076_v57 }
 0x669   : > { %2140 = vmatprep.mubr.msk.bf16.mxu1 %vm2762_vm1, %v2761_v8 }
 0x66b   : > { %v2365_v58 = vpop.eup %2364 }
 0x66c   : > { %v1191_v59 = vmul.f32 %v2365_v58, %v2357_v37 }
 0x66e   : > { %v1195_v2 = vpack.c.bf16 %v1191_v59, %v1191_v59 }
 0x66f   : > { %v1192_v60 = vld [vmem:[%s3320_s8] sm:$0xff] }
 0x670   : > { %v1427_v61 = vpop.xlane.xlu0 %1426  ;;  %v1193_v62 = vadd.f32 %v1192_v60, %v1191_v59 }
 0x672   : > { %1194 = vst.msk [vmem:[%s3320_s8] sm:$0xff] %vm1007_vm2, %v1193_v62  ;;  %v3380_v62 = vld [vmem:[#allocation12] ss:$0 sm:$0xff] }
 0x674   : > { %v1197_v63 = vpop.permute.xlu0 %1196 }
 0x675   : > { %v1202_v1 = vsel %vm1085_vm4, %v1197_v63, 0 }
 0x676   : > { %2139 = vmatpush3.bf16.msra.mxu1 %v1202_v1  ;;  %v3382_v1 = vld [vmem:[#allocation14] ss:$0 sm:$0xff] }
 0x677   : > { %2150 = vmatprep.subr.bf16.mxu1 %v2761_v8 }
 0x679   : > { %2141 = vmatmul.mubr.msk.bf16.vlgmr.msra.gmra.mrb[12].mxu1 %vm1007_vm2, %v1195_v2  ;;  %v1311_v10 = vld [vmem:[%s3320_s8] sm:$0xff] }
 0x67a   : > { %2152 = vmatprep.mubr.msk.bf16.mxu1 %vm2762_vm1, %v2761_v8 }
 0x68d   : > { %v1308_v3 = vpop.xlane.xlu1 %1307 }
 0x68e   : > { %2366 = vrcp.f32 %v1308_v3  ;;  %v3388_v3 = vld [vmem:[%s3603_s15] ss:$0 sm:$0xff]  ;;  %s1811_s15 = sshll.u32 %s3320_s8, 4  ;;  %s1812_s15 = int_to_ptr.vmem [resolvable:$true] %s1811_s15 }
 0x68f   : > { %2368 = vrcp.f32 %v1427_v61  ;;  %s2632_s20 = scalar_lea.vmem %s1812_s15, 128 }
 0x690   : > { %p2633_p4 = scmp.ne.s32.totalorder %s1812_s15, %s2632_s20 }
 0x691   : > { %v1316_v4 = vpop.permute.xlu1 %1315 }
 0x692   : > { %v1321_v5 = vsel %vm1085_vm4, %v1316_v4, 0  ;;  %p2634_p9 = pnand %p2633_p4, %p3609_p5 }
 0x693   : > { %2151 = vmatpush3.bf16.msra.mxu1 %v1321_v5 }
 0x694   : > { %2162 = vmatprep.subr.bf16.mxu1 %v2761_v8  ;;  %p2635_p0 = pneg %p2634_p9 }
 0x695   : > { %v1435_v9 = vpop.permute.xlu1 %1434 }
 0x696   : > { %v1440_v14 = vsel %vm1085_vm4, %v1435_v9, 0 }
 0x698   : > { %v2367_v6 = vpop.eup %2366 }
 0x699   : > { %v1310_v7 = vmul.f32 %v2367_v6, %v2361_v40  ;;  %v2369_v13 = vpop.eup %2368 }
 0x69a   : > { %v1429_v16 = vmul.f32 %v2369_v13, %v3325_v44 }
 0x69b   : > { %v1314_v11 = vpack.c.bf16 %v1310_v7, %v1310_v7  ;;  %v1312_v12 = vadd.f32 %v1311_v10, %v1310_v7 }
 0x69c   : > { %v1433_v18 = vpack.c.bf16 %v1429_v16, %v1429_v16 }
 0x69d   : > { %2153 = vmatmul.mubr.msk.bf16.vlgmr.msra.gmra.mrb[16].mxu1 %vm1007_vm2, %v1314_v11  ;;  %1313 = vst.msk [vmem:[%s3320_s8] sm:$0xff] %vm1007_vm2, %v1312_v12 }
 0x69e   : > { %2163 = vmatpush3.bf16.msra.mxu1 %v1440_v14  ;;  %2164 = vmatprep.mubr.msk.bf16.mxu1 %vm2762_vm1, %v2761_v8  ;;  %v2346_v14 = vld [vmem:[%s3604_s18] sm:$0xff]  }
 0x69f   : > { %2176 = vmatprep.subr.bf16.mxu1 %v2761_v8 }
 0x6a4   : > { %v1430_v19 = vld [vmem:[%s3320_s8] sm:$0xff] }
 0x6a5   : > { %2165 = vmatmul.mubr.msk.bf16.vlgmr.msra.gmra.mrb[20].mxu1 %vm1007_vm2, %v1433_v18  ;;  %v1431_v20 = vadd.f32 %v1430_v19, %v1429_v16  ;;  %v2348_v16 = vld [vmem:[%s3605_s6] sm:$0xff]   ;;  %v2349_v18 = vld [vmem:[%s3605_s6 + $0x8] sm:$0xff]  }
 0x6a6   : > { %2180 = vmatprep.mubr.msk.bf16.mxu1 %vm2762_vm1, %v2761_v8  ;;  %2177 = vmatpush3.bf16.msra.mxu1 %v2346_v14 }
 0x6a7   : > { %1432 = vst.msk [vmem:[%s3320_s8] sm:$0xff] %vm1007_vm2, %v1431_v20  ;;  %2178 = vmatprep.subr.bf16.mxu1 %v2761_v8 }
 0x6ae   : > { %v1488_v21 = vld [vmem:[%s3320_s8] sm:$0xff] }
 0x6af   : > { %v1489_v22 = vmul.f32 0.25, %v1488_v21 }
 0x6b1   : > { %1490 = vst.msk [vmem:[%s3320_s8] sm:$0xff] %vm1007_vm2, %v1489_v22 }
 0x73b   : > { %v1123_v23 = vpop.f32.mrb[8].mxu1 }
 0x73c   : > { %1129 = vst.msk [vmem:[#allocation2] sm:$0xff] %vm1007_vm2, %v1123_v23  ;;  %v2130_v24 = vpop.f32.mrb[9].mxu1 }
 0x73d   : > { %v1126_v25 = vpop.f32.mrb[10].mxu1 }
 0x73e   : > { %v2131_v26 = vpop.f32.mrb[11].mxu1 }
 0x74c   : > { %v1238_v27 = vpop.f32.mrb[12].mxu1 }
 0x74d   : > { %1245 = vrot.lane.b32.xlu0 %v1238_v27, %s2775_s12  ;;  %v2142_v28 = vpop.f32.mrb[13].mxu1  ;;  %v2350_v27 = vld [vmem:[%s3605_s6 + $0x10] sm:$0xff]  }
 0x74e   : > { %v1241_v29 = vpop.f32.mrb[14].mxu1  ;;  %v2351_v28 = vld [vmem:[%s3605_s6 + $0x18] sm:$0xff]  }
 0x74f   : > { %v2143_v30 = vpop.f32.mrb[15].mxu1 }
 0x770   : > { %v1357_v33 = vpop.f32.mrb[16].mxu1 }
 0x771   : > { %1364 = vrot.lane.b32.xlu1 %v1357_v33, %s2776_s4  ;;  %v2154_v34 = vpop.f32.mrb[17].mxu1 }
 0x772   : > { %v1360_v35 = vpop.f32.mrb[18].mxu1 }
 0x773   : > { %v2155_v36 = vpop.f32.mrb[19].mxu1 }
 0x778   : > { %v1476_v37 = vpop.f32.mrb[20].mxu1 }
 0x779   : > { %1483 = vrot.lane.b32.xlu0 %v1476_v37, %s2777_s21  ;;  %v2166_v38 = vpop.f32.mrb[21].mxu1 }
 0x77a   : > { %v1479_v39 = vpop.f32.mrb[22].mxu1 }
 0x77b   : > { %v2167_v41 = vpop.f32.mrb[23].mxu1 }
 0x7bf   : > { %v1246_v42 = vpop.permute.xlu0 %1245 }
 0x7c0   : > { %1249 = vst.msk [vmem:[#allocation2] sm:$0xff] %vm1248_vm5, %v1246_v42 }
 0x7e3   : > { %v1365_v43 = vpop.permute.xlu1 %1364 }
 0x7e4   : > { %1368 = vst.msk [vmem:[#allocation2] sm:$0xff] %vm1367_vm6, %v1365_v43 }
 0x7eb   : > { %v1484_v44 = vpop.permute.xlu0 %1483 }
 0x7ec   : > { %1487 = vst.msk [vmem:[#allocation2] sm:$0xff] %vm1486_vm7, %v1484_v44 }
 0x7f3   : > { %v1491_v45 = vld [vmem:[#allocation2] sm:$0xff] }
 0x7f4   : > { %v1492_v46 = vpack.c.bf16 %v1491_v45, %v1491_v45 }
 0x7f6   : > { %2173 = vmatmul.mubr.msk.bf16.vlgmr.msra.gmra.mrb[16].mxu0 %vm825_vm0, %v1492_v46 }
 0x7f7   : > { %2192 = vmatprep.mubr.msk.bf16.mxu0 %vm2762_vm1, %v2761_v8  ;;  %2185 = vmatpush3.bf16.msra.mxu0 %v2348_v16 }
 0x7f8   : > { %2186 = vmatprep.subr.bf16.mxu0 %v2761_v8 }
 0x7fb   : > { %2187 = vmatpush3.bf16.msra.mxu0 %v2349_v18 }
 0x7fc   : > { %2188 = vmatprep.subr.bf16.mxu0 %v2761_v8 }
 0x7ff   : > { %2189 = vmatpush3.bf16.msra.mxu0 %v2350_v27 }
 0x800   : > { %2190 = vmatprep.subr.bf16.mxu0 %v2761_v8  ;;  %v2059_v8 = vld [vmem:[%s3607_s16] ss:$0 sm:$0xff] }
 0x803   : > { %2191 = vmatpush3.bf16.msra.mxu0 %v2351_v28 }
 0x8c9   : > { %v1553_v40 = vpop.f32.mrb[16].mxu0 }
 0x8ca   : > { %v1554_v48 = vadd.f32 %v2048_v47, %v1553_v40  ;;  %v2174_v49 = vpop.f32.mrb[17].mxu0 }
 0x8cb   : > { %v1556_v50 = vpop.f32.mrb[18].mxu0 }
 0x8cc   : > { %v2175_v51 = vpop.f32.mrb[19].mxu0  ;;  %v1559_v52 = vsel %vm825_vm0, %v1554_v48, 0.0 }
 0x8cd   : > { %1560 = vadd.xlane.f32.xlu1 %v1559_v52 }
 0x95a   : > { %v1561_v53 = vpop.xlane.xlu1 %1560 }
 0x95b   : > { %v1562_v54 = vmul.f32 0.03125, %v1561_v53 }
 0x95d   : > { %v1563_v55 = vsub.f32 %v1554_v48, %v1562_v54 }
 0x95f   : > { %v1564_v56 = vmul.f32 %v1563_v55, %v1563_v55 }
 0x961   : > { %v1565_v57 = vsel %vm825_vm0, %v1564_v56, 0.0 }
 0x962   : > { %1566 = vadd.xlane.f32.xlu0 %v1565_v57 }
 0x9ef   : > { %v1567_v58 = vpop.xlane.xlu0 %1566 }
 0x9f0   : > { %v1568_v59 = vmul.f32 0.03125, %v1567_v58 }
 0x9f2   : > { %v1569_v60 = vadd.f32 1e-05, %v1568_v59 }
 0x9f4   : > { %2370 = vrsqrt.f32 %v1569_v60 }
 0x9fe   : > { %v2371_v61 = vpop.eup %2370 }
 0x9ff   : > { %v1571_v63 = vmul.f32 %v2371_v61, %v1563_v55 }
 0xa01   : > { %v1578_v2 = vmul.f32 %v3380_v62, %v1571_v63 }
 0xa03   : > { %v1585_v4 = vadd.f32 %v3382_v1, %v1578_v2 }
 0xa05   : > { %v1592_v5 = vmul.f32 %v3388_v3, %v1585_v4 }
 0xa07   : > { %v3393_v6 = vadd.f32 %v1592_v5, %v3225_v0  ;;  %v2347_v0 = vld [vmem:[%s3604_s18 + $0x8] sm:$0xff]  }
 0xa08   : > { %2179 = vmatpush3.bf16.msra.mxu1 %v2347_v0 }
 0xa09   : > { %v1594_v7 = vsel %vm825_vm0, %v3393_v6, 0.0 }
 0xa0a   : > { %1595 = vadd.xlane.f32.xlu0 %v1594_v7 }
 0xa97   : > { %v1596_v9 = vpop.xlane.xlu0 %1595 }
 0xa98   : > { %v1597_v10 = vmul.f32 0.03125, %v1596_v9 }
 0xa9a   : > { %v1598_v11 = vsub.f32 %v3393_v6, %v1597_v10 }
 0xa9c   : > { %v1599_v12 = vmul.f32 %v1598_v11, %v1598_v11 }
 0xa9e   : > { %v1600_v13 = vsel %vm825_vm0, %v1599_v12, 0.0 }
 0xa9f   : > { %1601 = vadd.xlane.f32.xlu1 %v1600_v13 }
 0xb2c   : > { %v1602_v19 = vpop.xlane.xlu1 %1601 }
 0xb2d   : > { %v1603_v20 = vmul.f32 0.03125, %v1602_v19 }
 0xb2f   : > { %v1604_v21 = vadd.f32 1e-05, %v1603_v20 }
 0xb31   : > { %2372 = vrsqrt.f32 %v1604_v21 }
 0xb3b   : > { %v2373_v22 = vpop.eup %2372 }
 0xb3c   : > { %v1606_v23 = vmul.f32 %v2373_v22, %v1598_v11 }
 0xb3e   : > { %v1607_v24 = vmul.f32 %v3249_v15, %v1606_v23  ;;  %v2055_v15 = vld [vmem:[%s3606_s3] ss:$0 sm:$0xff]  ;;  %s2778_s3 = smov [#allocation19]  }
 0xb3f   : > { %s2636_s12 = sshll.u32 %s2778_s3, 4  ;;  %s2637_s12 = int_to_ptr.vmem [resolvable:$false] %s2636_s12 }
 0xb40   : > { %v1608_v25 = vadd.f32 %v3251_v17, %v1607_v24  ;;  %s2638_s1 = scalar_lea.vmem %s2637_s12, 256  ;;  %p2639_p8 = scmp.lt.s32.totalorder %s1812_s15, %s2637_s12 }
 0xb41   : > { %p2640_p7 = scmp.lt.s32.totalorder %s2638_s1, %s2632_s20 }
 0xb42   : > { %v1609_v26 = vpack.c.bf16 %v1608_v25, %v1608_v25 }
 0xb43   : > { %p2641_p11 = por %p2640_p7, %p2639_p8 }
 0xb44   : > { %2181 = vmatmul.mubr.msk.bf16.vlgmr.msra.gmra.mrb[24].mxu1 %vm825_vm0, %v1609_v26 }
 0xb45   : > { %p2642_p10 = pnand %p2641_p11, %p2635_p0 }
 0xc17   : > { %v1670_v17 = vpop.f32.mrb[24].mxu1 }
 0xc18   : > { %v1671_v29 = vadd.f32 %v2055_v15, %v1670_v17  ;;  %v2182_v30 = vpop.f32.mrb[25].mxu1 }
 0xc19   : > { %v1673_v31 = vpop.f32.mrb[26].mxu1 }
 0xc1a   : > { %v1676_v32 = vmax.f32 %v1671_v29, 0.0  ;;  %v2183_v33 = vpop.f32.mrb[27].mxu1 }
 0xc1c   : > { %v1677_v34 = vpack.c.bf16 %v1676_v32, %v1676_v32 }
 0xc1e   : > { %2193 = vmatmul.mubr.msk.bf16.vlgmr.msra.gmra.mrb[20].mxu0 %vm1717_vm8, %v1677_v34 }
 0xcf1   : > { %v1755_v35 = vpop.f32.mrb[20].mxu0 }
 0xcf2   : > { %v1756_v36 = vadd.f32 %v2059_v8, %v1755_v35  ;;  %v2194_v37 = vpop.f32.mrb[21].mxu0 }
 0xcf3   : > { %v1758_v38 = vpop.f32.mrb[22].mxu0 }
 0xcf4   : > { %v2195_v39 = vpop.f32.mrb[23].mxu0  ;;  %v1761_v41 = vsel %vm825_vm0, %v1756_v36, 0.0 }
 0xcf5   : > { %1762 = vadd.xlane.f32.xlu0 %v1761_v41 }
 0xd82   : > { %v1763_v42 = vpop.xlane.xlu0 %1762 }
 0xd83   : > { %v1764_v43 = vmul.f32 0.03125, %v1763_v42 }
 0xd85   : > { %v1765_v44 = vsub.f32 %v1756_v36, %v1764_v43 }
 0xd87   : > { %v1766_v45 = vmul.f32 %v1765_v44, %v1765_v44 }
 0xd89   : > { %v1767_v46 = vsel %vm825_vm0, %v1766_v45, 0.0 }
 0xd8a   : > { %1768 = vadd.xlane.f32.xlu1 %v1767_v46 }
 0xd8b   : > { %2645 = shalt.err (!%p2642_p10)
}
 0xd8c   : > { %s2646_s8 = scalar_lea.hbm %s3438_s28, 128  ;;  %s2650_s21 = scalar_lea.hbm %s3608_s7, 256 }
 0xd8d   : > { %p2647_p12 = scmp.ne.s32.totalorder %s3438_s28, %s2646_s8  ;;  %p2651_p3 = scmp.lt.u32.totalorder %s3438_s28, %s3608_s7 }
 0xd8e   : > { %p2652_p2 = scmp.lt.u32.totalorder %s2650_s21, %s2646_s8  ;;  %p2654_p4 = scmp.lt.u32.totalorder %s2646_s8, %s3438_s28 }
 0xd8f   : > { %p2648_p13 = pnand %p2647_p12, %p3609_p5 }
 0xd90   : > { %p2653_p6 = por %p2652_p2, %p2651_p3 }
 0xd91   : > { %p2649_p1 = pneg %p2648_p13 }
 0xd92   : > { %p2655_p9 = por %p2654_p4, %p2653_p6 }
 0xd94   : > { %p2656_p0 = pnand %p2655_p9, %p2649_p1 }
 0xd96   : > { %2659 = shalt.err (!%p2656_p0)
}
 0xd97   : > { %2229 = dma.vmem_to_hbm [thread:$0]  (%p3609_p5), %s1812_s15, 128, %s3438_s28, %s1785_s0  }
 0xd98   : > { %s806_s20 = scalar_lea.vmem [#allocation18], %s2028_s5  ;;  %s3610_s0 = sld [smem:[#allocation46_spill]] }
 0xd99   : > { %s1798_s1 = sshll.u32 %s806_s20, 4  ;;  %s1780_s16 = scalar_lea.sflag [#allocation5], %s3190_s19  ;;  %s3472_s1 = int_to_ptr.vmem [resolvable:$true] %s1798_s1 }
 0xd9a   : > { %s2660_s5 = scalar_lea.vmem %s3472_s1, 128  ;;  %s2779_s4 = smov [#allocation18]  }
 0xd9b   : > { %p2661_p8 = scmp.ne.s32.totalorder %s3472_s1, %s2660_s5  ;;  %s2664_s29 = sshll.u32 %s2779_s4, 4  ;;  %s2665_s29 = int_to_ptr.vmem [resolvable:$false] %s2664_s29 }
 0xd9c   : > { %s2666_s21 = scalar_lea.vmem %s2665_s29, 256  ;;  %p2667_p10 = scmp.lt.s32.totalorder %s3472_s1, %s2665_s29 }
 0xd9d   : > { %p2662_p7 = pnand %p2661_p8, %p3609_p5  ;;  %p2668_p12 = scmp.lt.s32.totalorder %s2666_s21, %s2660_s5 }
 0xd9e   : > { %s3470_s8 = scalar_lea.hbm %s3610_s0, %s2067_s10 }
 0xd9f   : > { %p2663_p11 = pneg %p2662_p7  ;;  %p2669_p13 = por %p2668_p12, %p2667_p10 }
 0xda1   : > { %p2670_p1 = pnand %p2669_p13, %p2663_p11 }
 0xe17   : > { %v1769_v47 = vpop.xlane.xlu1 %1768 }
 0xe18   : > { %v1770_v40 = vmul.f32 0.03125, %v1769_v47 }
 0xe1a   : > { %v1771_v48 = vadd.f32 1e-05, %v1770_v40 }
 0xe1c   : > { %2374 = vrsqrt.f32 %v1771_v48 }
 0xe26   : > { %v2375_v49 = vpop.eup %2374 }
 0xe27   : > { %v1773_v50 = vmul.f32 %v2375_v49, %v1765_v44 }
 0xe29   : > { %v1774_v51 = vmul.f32 %v3380_v62, %v1773_v50 }
 0xe2b   : > { %v1775_v52 = vadd.f32 %v3382_v1, %v1774_v51 }
 0xe2d   : > { %v1776_v53 = vmul.f32 %v3388_v3, %v1775_v52 }
 0xe2f   : > { %v1777_v54 = vadd.f32 %v1776_v53, %v3393_v6 }
 0xe31   : > { %1778 = vst.msk [vmem:[%s806_s20] sm:$0xff] %vm825_vm0, %v1777_v54 }
 0xe32   : > { %2673 = shalt.err (!%p2670_p1)
}
 0xe33   : > { %s2674_s19 = scalar_lea.hbm %s3470_s8, 128  ;;  %s2678_s12 = scalar_lea.hbm %s3610_s0, 256 }
 0xe34   : > { %p2675_p3 = scmp.ne.s32.totalorder %s3470_s8, %s2674_s19  ;;  %p2679_p4 = scmp.lt.u32.totalorder %s3470_s8, %s3610_s0 }
 0xe35   : > { %p2680_p9 = scmp.lt.u32.totalorder %s2678_s12, %s2674_s19  ;;  %p2682_p8 = scmp.lt.u32.totalorder %s2674_s19, %s3470_s8 }
 0xe36   : > { %p2676_p2 = pnand %p2675_p3, %p3609_p5 }
 0xe37   : > { %p2681_p0 = por %p2680_p9, %p2679_p4 }
 0xe38   : > { %p2677_p6 = pneg %p2676_p2 }
 0xe39   : > { %p2683_p7 = por %p2682_p8, %p2681_p0 }
 0xe3b   : > { %p2684_p11 = pnand %p2683_p7, %p2677_p6 }
 0xe3d   : > { %2687 = shalt.err (!%p2684_p11)
}
 0xe3e   : > { %2228 = dma.vmem_to_hbm [thread:$0]  (%p3609_p5), %s3472_s1, 128, %s3470_s8, %s1780_s16  }
 0xe3f PF: > { %s1823_s15 = sand.u32 1, %s2738_s2   ;;  %p3611_p10 = scmp.ne.s32.totalorder %s3585_s22, 0 }
 0xe40   : > { %p3612_p12 = scmp.ge.s32.totalorder %s2750_s27, 2  ;;  %s1824_s5 = scalar_lea.sflag [#allocation5], %s1823_s15 }
 0xe42   : > { %p2262_p13 = pnand %p3612_p12, %p3611_p10 }
 0xe44   : > { %2729 = dma.done.wait (!%p2262_p13), %s1824_s5, 128  }
 0xe45   : > { %2731 = vsyncadd (!%p2262_p13), %s1824_s5, 4294967168  ;;  %s1833_s4 = scalar_lea.sflag [#allocation20], %s1823_s15 }
 0xe46   : > { %2733 = dma.done.wait (!%p2262_p13), %s1833_s4, 128  }
 0xe47   : > { %2735 = vsyncadd (!%p2262_p13), %s1833_s4, 4294967168  ;;  %p44_p5 = scmp.ge.s32.totalorder %s3088_s23, 4   ;;  %s3613_s2 = smov %s2742_s25 }
 0xe48   : > { %s3614_s25 = smov %s2746_s26  ;;  %s3615_s26 = smov %s3100_s17 }
 0xe49   : > { %s3616_s27 = smov %s3088_s23  ;;  %46 = sbr.rel (!%p44_p5) target bundleno = 32 (0x20), region = 206 }
 0xe50   :  { %1838 = vsyncpa [#allocation4], 1 }
 0xe51   :  { %1840 = vsyncpa [#allocation4 + $0x1], 1 }
 0xe52   :  { %1841 = vsyncpa [#allocation7], 1 }
 0xe53   :  { %1843 = vsyncpa [#allocation7 + $0x1], 1 }
 0xe54   :  { %1844 = vsyncpa [#allocation10], 1 }
 0xe55   :  { %1845 = vsyncpa [#allocation13], 1 }
 0xe56   :  { %1846 = vsyncpa [#allocation16], 1 }
 0xe57   :  { %1847 = vsyncpa [#allocation5], 1 }
 0xe58   :  { %1849 = vsyncpa [#allocation5 + $0x1], 1 }
 0xe59   :  { %1850 = vsyncpa [#allocation20], 1 }
 0xe5a   :  { %1852 = vsyncpa [#allocation20 + $0x1], 1 }

</bundles_post_ra>
